<compile_context>
chip_gen: v6e
topology: v6e:2x2x1
jax: 0.10.0
libtpu: 0.0.40
codegen_flags: <defaults>
</compile_context>

<pallas_src>
import jax
import jax.numpy as jnp
from jax import lax
from jax.experimental import pallas as pl
from jax.experimental.pallas import tpu as pltpu


def _prep_kernel(adj_ref, x_ref, xs_ref, norm_ref, deg_ref):
    """Accumulate row degree over K tiles; emit norm and xs = norm*x at last K."""
    k = pl.program_id(1)

    @pl.when(k == 0)
    def _():
        deg_ref[...] = jnp.zeros_like(deg_ref)

    deg_ref[...] += jnp.sum(adj_ref[...].astype(jnp.float32), axis=-1,
                            keepdims=True)                       # (tm, 1)

    @pl.when(k == pl.num_programs(1) - 1)
    def _():
        norm = lax.rsqrt(1.0 + deg_ref[...])                     # (tm, 1) f32
        norm_ref[...] = norm
        xs_ref[...] = (norm * x_ref[...]).astype(xs_ref.dtype)   # bf16 RHS


def _make_gcn_kernel(resident_xs: bool, tk: int):
    """out_block += adj_tile @ xs_tile; at last K: out = norm * (out + xs_i)."""

    def kernel(adj_ref, xs_k_ref, xs_i_ref, norm_ref, out_ref):
        k = pl.program_id(1)

        @pl.when(k == 0)
        def _():
            out_ref[...] = jnp.zeros_like(out_ref)

        # Widen compact adj (int8 / fp8 / bf16) to bf16 for the MXU; the VPU
        # cast hides under the DMA on this memory-bound kernel.
        a = adj_ref[...].astype(jnp.bfloat16)
        if resident_xs:
            start = pl.multiple_of(k * tk, 128)
            xs_tile = xs_k_ref[pl.ds(start, tk), :]       # slice resident xs
        else:
            xs_tile = xs_k_ref[...]                       # streamed K panel
        out_ref[...] += jnp.dot(a, xs_tile, preferred_element_type=jnp.float32)

        @pl.when(k == pl.num_programs(1) - 1)
        def _():
            norm = norm_ref[...]                          # (tm, 1) f32
            self_term = xs_i_ref[...].astype(jnp.float32)  # == norm * x (bf16)
            out_ref[...] = norm * (out_ref[...] + self_term)

    return kernel


def pure_conv_gcn(x, adj, norm=None, *, tm=256, tk=1024, tk_prep=2048,
                  resident_xs=None, vmem_limit_bytes=48 << 20):
    """PureConv(indim, indim, aggr='gcn').forward(x, adj_t) with dense adj.

    x:    (N, D) float32 node features (D % 128 == 0).
    adj:  (N, N) adjacency; pass it in a compact dtype upstream (int8 for 0/1
          edges is exact; bf16/fp8 for small weights).  adj[i, j] must be the
          weight aggregated INTO node i FROM node j.
    norm: optional (N,) or (N, 1) float32 rsqrt(1 + degree).  Supply it when
          the same adj is reused across layers so the adjacency row-sum pass
          runs once per graph, not once per layer.

    Tile sizes are clamped to N and must divide N.  The self term and matmul
    RHS use bf16 xs, so results match the f32 reference at bf16 tolerance.
    """
    N, D = x.shape
    assert adj.shape == (N, N)
    tm = min(tm, N)
    tk = min(tk, N)
    tk_prep = min(tk_prep, N)
    assert N % tm == 0 and N % tk == 0 and N % tk_prep == 0
    assert D % 128 == 0
    assert tm % 32 == 0 and tk % 128 == 0 and tk_prep % 128 == 0

    x = x.astype(jnp.float32)
    if adj.dtype.itemsize >= 4:
        # TODO(synk): produce adj in a compact dtype upstream (int8 for 0/1
        # edges, bf16/fp8 otherwise); this wrapper convert alone moves more
        # HBM bytes than either Pallas pass.  bf16 is exact only for 0/1 /
        # small-integer edge weights.
        adj = adj.astype(jnp.bfloat16)

    if resident_xs is None:
        # Keep xs fully VMEM-resident when it is comfortably small even after
        # double-buffering and on v7x's 64 MiB/TC VMEM.
        resident_xs = (N * D * 2) <= (8 << 20)

    cparams = pltpu.CompilerParams(
        # Row blocks are embarrassingly parallel (feeds both TCs on v7x); the
        # K axis is the reduction and stays last / "arbitrary".
        dimension_semantics=("parallel", "arbitrary"),
        vmem_limit_bytes=vmem_limit_bytes)

    if norm is None:
        xs, norm = pl.pallas_call(
            _prep_kernel,
            out_shape=(jax.ShapeDtypeStruct((N, D), jnp.bfloat16),
                       jax.ShapeDtypeStruct((N, 1), jnp.float32)),
            grid_spec=pltpu.PrefetchScalarGridSpec(
                num_scalar_prefetch=0,
                grid=(N // tm, N // tk_prep),
                in_specs=[pl.BlockSpec((tm, tk_prep), lambda i, k: (i, k)),  # adj tile
                          pl.BlockSpec((tm, D), lambda i, k: (i, 0))],       # x rows
                out_specs=[pl.BlockSpec((tm, D), lambda i, k: (i, 0)),       # xs rows
                           pl.BlockSpec((tm, 1), lambda i, k: (i, 0))],      # norm rows
                scratch_shapes=[pltpu.VMEM((tm, 1), jnp.float32)]),          # degree acc
            compiler_params=cparams,
        )(adj, x)
    else:
        # Caller-provided norm: skip the adjacency row-sum pass entirely.
        norm = norm.reshape(N, 1).astype(jnp.float32)
        xs = (norm * x).astype(jnp.bfloat16)   # O(N*D) elementwise, negligible

    if resident_xs:
        # xs DMA'd from HBM exactly once; sliced per K step in the kernel.
        xs_k_spec = pl.BlockSpec((N, D), lambda i, k: (0, 0))
    else:
        xs_k_spec = pl.BlockSpec((tk, D), lambda i, k: (k, 0))

    out = pl.pallas_call(
        _make_gcn_kernel(resident_xs, tk),
        out_shape=jax.ShapeDtypeStruct((N, D), jnp.float32),
        grid_spec=pltpu.PrefetchScalarGridSpec(
            num_scalar_prefetch=0,
            grid=(N // tm, N // tk),
            in_specs=[pl.BlockSpec((tm, tk), lambda i, k: (i, k)),   # adj tile (compact)
                      xs_k_spec,                                     # xs K panel / resident
                      pl.BlockSpec((tm, D), lambda i, k: (i, 0)),    # xs rows (self term)
                      pl.BlockSpec((tm, 1), lambda i, k: (i, 0))],   # norm rows
            out_specs=pl.BlockSpec((tm, D), lambda i, k: (i, 0)),    # doubles as f32 acc
            scratch_shapes=[]),
        compiler_params=cparams,
    )(adj, xs, xs, norm)
    return out


def _reference(x, adj):
    adjf = adj.astype(jnp.float32)
    norm = lax.rsqrt(1.0 + jnp.sum(adjf, axis=-1)).reshape(-1, 1)
    xs = norm * x
    return norm * (adjf @ xs + xs)


if __name__ == "__main__":
    # PureConv has no learnable weights when indim == outdim (lin = Identity),
    # so the only inputs are x and the adjacency, built deterministically.
    N, D = 512, 128   # N nodes, D = indim = outdim
    key = jax.random.PRNGKey(0)
    kx, ka = jax.random.split(key)
    x = jax.random.normal(kx, (N, D), dtype=jnp.float32)
    # Sparse-ish random 0/1 adjacency, stored dense in int8 (exact, compact).
    adj = (jax.random.uniform(ka, (N, N)) < 0.05).astype(jnp.int8)

    ref = _reference(x, adj)

    # Default path: large tiles (clamped to N) + VMEM-resident xs.
    out = jax.block_until_ready(pure_conv_gcn(x, adj))
    assert out.shape == (N, D) and out.dtype == jnp.float32
    # xs (matmul RHS and self term) is bf16, so allow bf16-level error vs the
    # pure-f32 reference; adj, norm and the f32 accumulation are exact.
    assert jnp.allclose(out, ref, atol=5e-2, rtol=5e-2), float(
        jnp.max(jnp.abs(out - ref)))

    # Streamed-xs / multi-K-step path (exercises init/accumulate/finalize).
    out2 = jax.block_until_ready(
        pure_conv_gcn(x, adj, tm=128, tk=256, tk_prep=256, resident_xs=False))
    assert jnp.allclose(out2, ref, atol=5e-2, rtol=5e-2), float(
        jnp.max(jnp.abs(out2 - ref)))

    print("KERNEL_OK")
</pallas_src>

<mosaic_0001>
module attributes {stable_mosaic.version = 11 : i64} {
  func.func @_prep_kernel(%arg0: i32, %arg1: i32, %arg2: memref<256x512xi8, #tpu.memory_space<vmem>>, %arg3: memref<256x128xf32, #tpu.memory_space<vmem>>, %arg4: memref<256x128xbf16, #tpu.memory_space<vmem>>, %arg5: memref<256x1xf32, #tpu.memory_space<vmem>>, %arg6: memref<256x1xf32, #tpu.memory_space<vmem>>) attributes {dimension_semantics = [#tpu.dimension_semantics<parallel>, #tpu.dimension_semantics<arbitrary>], iteration_bounds = array<i64: 2, 1>, scalar_prefetch = 0 : i64, scratch_operands = 1 : i64, tpu.core_type = #tpu.core_type<tc>, window_params = [{transform_indices = @transform_0, window_bounds = array<i64: 256, 512>}, {transform_indices = @transform_1, window_bounds = array<i64: 256, 128>}, {transform_indices = @transform_2, window_bounds = array<i64: 256, 128>}, {transform_indices = @transform_3, window_bounds = array<i64: 256, 1>}]} {
    %c0_i32 = arith.constant 0 : i32
    %0 = arith.cmpi eq, %arg1, %c0_i32 : i32
    %1 = arith.extui %0 : i1 to i32
    %c0_i32_0 = arith.constant 0 : i32
    %2 = arith.cmpi ne, %1, %c0_i32_0 : i32
    scf.if %2 {
      %cst_8 = arith.constant 0.000000e+00 : f32
      %13 = vector.broadcast %cst_8 : f32 to vector<256x1xf32>
      %c0_9 = arith.constant 0 : index
      %c0_10 = arith.constant 0 : index
      %14 = vector.load %arg6[%c0_9, %c0_10] : memref<256x1xf32, #tpu.memory_space<vmem>>, vector<256x1xf32>
      tpu.vector_store %arg6[%c0_9, %c0_10], %13 {strides = array<i32>} : memref<256x1xf32, #tpu.memory_space<vmem>>, vector<256x1xf32>,
    } else {
    }
    %c0 = arith.constant 0 : index
    %c0_1 = arith.constant 0 : index
    %3 = vector.load %arg6[%c0, %c0_1] : memref<256x1xf32, #tpu.memory_space<vmem>>, vector<256x1xf32>
    %c0_2 = arith.constant 0 : index
    %c0_3 = arith.constant 0 : index
    %4 = vector.load %arg2[%c0_2, %c0_3] : memref<256x512xi8, #tpu.memory_space<vmem>>, vector<256x512xi8>
    %5 = arith.sitofp %4 : vector<256x512xi8> to vector<256x512xf32>
    %cst = arith.constant dense<0.000000e+00> : vector<256xf32>
    %6 = vector.multi_reduction <add>, %5, %cst [1] : vector<256x512xf32> to vector<256xf32>
    %7 = vector.shape_cast %6 : vector<256xf32> to vector<256x1xf32>
    %8 = arith.addf %3, %7 : vector<256x1xf32>
    %c0_4 = arith.constant 0 : index
    %c0_5 = arith.constant 0 : index
    %9 = vector.load %arg6[%c0_4, %c0_5] : memref<256x1xf32, #tpu.memory_space<vmem>>, vector<256x1xf32>
    tpu.vector_store %arg6[%c0_4, %c0_5], %8 {strides = array<i32>} : memref<256x1xf32, #tpu.memory_space<vmem>>, vector<256x1xf32>,
    %c0_i32_6 = arith.constant 0 : i32
    %10 = arith.cmpi eq, %arg1, %c0_i32_6 : i32
    %11 = arith.extui %10 : i1 to i32
    %c0_i32_7 = arith.constant 0 : i32
    %12 = arith.cmpi ne, %11, %c0_i32_7 : i32
    scf.if %12 {
      %c0_8 = arith.constant 0 : index
      %c0_9 = arith.constant 0 : index
      %13 = vector.load %arg6[%c0_8, %c0_9] : memref<256x1xf32, #tpu.memory_space<vmem>>, vector<256x1xf32>
      %cst_10 = arith.constant 1.000000e+00 : f32
      %14 = vector.broadcast %cst_10 : f32 to vector<256x1xf32>
      %15 = arith.addf %14, %13 : vector<256x1xf32>
      %16 = math.rsqrt %15 : vector<256x1xf32>
      %c0_11 = arith.constant 0 : index
      %c0_12 = arith.constant 0 : index
      %17 = vector.load %arg5[%c0_11, %c0_12] : memref<256x1xf32, #tpu.memory_space<vmem>>, vector<256x1xf32>
      tpu.vector_store %arg5[%c0_11, %c0_12], %16 {strides = array<i32>} : memref<256x1xf32, #tpu.memory_space<vmem>>, vector<256x1xf32>,
      %c0_13 = arith.constant 0 : index
      %c0_14 = arith.constant 0 : index
      %18 = vector.load %arg3[%c0_13, %c0_14] : memref<256x128xf32, #tpu.memory_space<vmem>>, vector<256x128xf32>
      %19 = vector.broadcast %16 : vector<256x1xf32> to vector<256x128xf32>
      %20 = arith.mulf %19, %18 : vector<256x128xf32>
      %21 = arith.truncf %20 : vector<256x128xf32> to vector<256x128xbf16>
      %c0_15 = arith.constant 0 : index
      %c0_16 = arith.constant 0 : index
      %22 = vector.load %arg4[%c0_15, %c0_16] : memref<256x128xbf16, #tpu.memory_space<vmem>>, vector<256x128xbf16>
      tpu.vector_store %arg4[%c0_15, %c0_16], %21 {strides = array<i32>} : memref<256x128xbf16, #tpu.memory_space<vmem>>, vector<256x128xbf16>,
    } else {
    }
    return
  }
  func.func @transform_0(%arg0: i32, %arg1: i32) -> (i32, i32) {
    %c0_i32 = arith.constant 0 : i32
    return %arg0, %arg1 : i32, i32
  }
  func.func @transform_1(%arg0: i32, %arg1: i32) -> (i32, i32) {
    %c0_i32 = arith.constant 0 : i32
    %c0_i32_0 = arith.constant 0 : i32
    return %arg0, %c0_i32 : i32, i32
  }
  func.func @transform_2(%arg0: i32, %arg1: i32) -> (i32, i32) {
    %c0_i32 = arith.constant 0 : i32
    %c0_i32_0 = arith.constant 0 : i32
    return %arg0, %c0_i32 : i32, i32
  }
  func.func @transform_3(%arg0: i32, %arg1: i32) -> (i32, i32) {
    %c0_i32 = arith.constant 0 : i32
    %c0_i32_0 = arith.constant 0 : i32
    return %arg0, %c0_i32 : i32, i32
  }
}

</mosaic_0001>

<bundles_post_ra>
// kernel: tpu_custom_call.1
= control target key start
LH: loop header
LB: loop body
LE: loop exit
PB: predicated region body
PF: predicated region fallthrough
CT: control target
= control target key end

     0   :  { %s2596_s0 = inlined_call_operand.hbm [shape: s8[512,512], index: 0, kind: input, shape index: {}]   ;;  %s2597_s1 = inlined_call_operand.hbm [shape: f32[512,128], index: 1, kind: input, shape index: {}]   ;;  %s2598_s2 = inlined_call_operand.hbm [shape: bf16[512,128], index: 2, kind: output, shape index: {0}]   ;;  %s2599_s3 = inlined_call_operand.vmem [shape: f32[512,1], index: 3, kind: output, shape index: {1}]  }
   0x1   :  { %2600 = sst [smem:[#allocation12_spill]] %s2596_s0 }
   0x2   :  { %9 = vsyncpa [#allocation4], 0 }
   0x3   :  { %11 = vsyncpa [#allocation4 + $0x1], 0 }
   0x4   :  { %12 = vsyncpa [#allocation7], 0 }
   0x5   :  { %14 = vsyncpa [#allocation7 + $0x1], 0 }
   0x6   :  { %15 = vsyncpa [#allocation5], 0 }
   0x7   :  { %17 = vsyncpa [#allocation5 + $0x1], 0  ;;  %s2015_s12 = smov 0   ;;  %s2017_s13 = smov 0  }
   0x8   :  { %s2019_s14 = smov 0   ;;  %s2021_s15 = smov 0  }
   0x9   :  { %s2023_s16 = smov 0   ;;  %s2025_s17 = smov 0  }
   0xa LB: > { %s1516_s18 = sadd.s32 4294967295, %s1982_s17   ;;  %s1517_s19 = sadd.s32 4294967294, %s1982_s17   ;;  %s1982_s17 = sphi %s2025_s17, %s23_s17   ;;  %s1978_s16 = sphi %s2023_s16, %s2613_s16   ;;  %s1974_s15 = sphi %s2021_s15, %s2612_s15   ;;  %s1970_s14 = sphi %s2019_s14, %s2611_s14   ;;  %s1966_s13 = sphi %s2017_s13, %s2610_s13   ;;  %s1962_s12 = sphi %s2015_s12, %s2609_s12  }
   0xb   : > { %s35_s20 = sadd.s32 1, %s1978_s16  ;;  %s44_s21 = sadd.s32 1, %s1970_s14 }
   0xc   : > { %p37_p0 = scmp.ge.s32.totalorder %s35_s20, 2  ;;  %p51_p1 = scmp.ne.s32.totalorder %s1970_s14, %s1966_s13 }
   0xd   : > { %p52_p2 = scmp.eq.s32.totalorder %s1982_s17, 0  ;;  %p57_p3 = scmp.ne.s32.totalorder %s1966_s13, %s1962_s12 }
   0xe   : > { %s2615_s20 = smov (%p37_p0, %s35_s20), 0  ;;  %p58_p5 = scmp.eq.s32.totalorder %s1516_s18, 0 }
   0xf   : > { %p2056_p4 = por %p52_p2, %p51_p1  ;;  %s39_s23 = ssub.s32 %s1978_s16, %s2615_s20 }
  0x10   : > { %p107_p6 = scmp.eq.s32.totalorder %s1516_s18, 1  ;;  %p42_p7 = scmp.eq.s32.totalorder %s39_s23, 0 }
  0x11   : > { %p2062_p8 = por %p58_p5, %p57_p3  ;;  %p113_p10 = scmp.eq.s32.totalorder %s1517_s19, 1 }
  0x12   : > { %p2066_p9 = por %p107_p6, %p51_p1  ;;  %p1519_p12 = scmp.ge.s32.totalorder %s1982_s17, 2 }
  0x13   : > { %s2071_s26 = scalar_select %p42_p7, %s1970_s14, %s44_s21  }
  0x14   : > { %p2073_p11 = por %p113_p10, %p57_p3  ;;  %p1718_p13 = scmp.lt.s32.totalorder %s1982_s17, 2 }
  0x15   : > { %s2080_s28 = sand.u32 1, %s1970_s14   ;;  %s1571_s30 = sshll.u32 %s1978_s16, 12 }
  0x16   : > { %s1520_s29 = sshll.u32 %s2080_s28, 8  ;;  %s2605_s0 = sld [smem:[#allocation12_spill]] }
  0x17   : > { %s163_s7 = scalar_lea.vmem [#allocation3], %s1520_s29  ;;  %p2093_p0 = pnand %p1718_p13, %p2056_p4 }
  0x18   : > { %s173_s8 = sshll.u32 %s163_s7, 4  ;;  %p1527_p1 = scmp.ge.s32.totalorder %s1982_s17, 1  ;;  %s174_s8 = int_to_ptr.vmem [resolvable:$true] %s173_s8 }
  0x19   : > { %s160_s10 = scalar_lea.sflag [#allocation4], %s2080_s28  ;;  %p1844_p2 = pneg %p2093_p0 }
  0x1a   : > { %s1855_s11 = scalar_lea.vmem %s174_s8, 4096  ;;  %s1984_s18 = smov [#allocation3]  }
  0x1b   : > { %p1856_p3 = scmp.ne.s32.totalorder %s174_s8, %s1855_s11  ;;  %s1860_s19 = sshll.u32 %s1984_s18, 4  ;;  %s1861_s19 = int_to_ptr.vmem [resolvable:$false] %s1860_s19 }
  0x1c   : > { %s172_s6 = scalar_lea.hbm %s2605_s0, %s1571_s30  ;;  %s1862_s21 = scalar_lea.vmem %s1861_s19, 8192 }
  0x1d   : > { %p1858_p5 = pnand %p1856_p3, %p1844_p2  ;;  %p1863_p4 = scmp.lt.s32.totalorder %s174_s8, %s1861_s19 }
  0x1e   : > { %p1864_p7 = scmp.lt.s32.totalorder %s1862_s21, %s1855_s11 }
  0x1f   : > { %p1859_p6 = pneg %p1858_p5 }
  0x20   : > { %p1865_p10 = por %p1864_p7, %p1863_p4 }
  0x22   : > { %p1866_p13 = pnand %p1865_p10, %p1859_p6 }
  0x24   : > { %1869 = shalt.err (!%p1866_p13)
}
  0x25   : > { %s1985_s22 = smov 512   ;;  %s1986_s23 = smov 32  }
  0x26   : > { %1710 = dma.hbm_to_vmem [thread:$0]  (!%p2093_p0), %s172_s6, 4096, %s174_s8, %s160_s10, %s1985_s22, %s1985_s22, %s1986_s23  }
  0x27   : > { %p202_p3 = scmp.lt.s32.totalorder %s1982_s17, 3  ;;  %s193_s7 = scalar_lea.hbm %s2597_s1, %s1571_s30 }
  0x28   : > { %s187_s18 = scalar_lea.vmem [#allocation6], %s1520_s29  ;;  %s184_s21 = scalar_lea.sflag [#allocation7], %s2080_s28 }
  0x29   : > { %p2114_p5 = pnand %p1527_p1, %p202_p3  ;;  %s194_s19 = sshll.u32 %s187_s18, 4  ;;  %s195_s19 = int_to_ptr.vmem [resolvable:$true] %s194_s19 }
  0x2a   : > { %s1883_s0 = scalar_lea.vmem %s195_s19, 4096  ;;  %s1987_s6 = smov [#allocation6]  }
  0x2b   : > { %p1884_p6 = scmp.ne.s32.totalorder %s195_s19, %s1883_s0  ;;  %s1888_s8 = sshll.u32 %s1987_s6, 4  ;;  %s1889_s8 = int_to_ptr.vmem [resolvable:$false] %s1888_s8 }
  0x2c   : > { %s1890_s30 = scalar_lea.vmem %s1889_s8, 8192  ;;  %p1891_p10 = scmp.lt.s32.totalorder %s195_s19, %s1889_s8 }
  0x2d   : > { %p1886_p4 = pnand %p1884_p6, %p1844_p2  ;;  %p1892_p1 = scmp.lt.s32.totalorder %s1890_s30, %s1883_s0 }
  0x2f   : > { %p1887_p7 = pneg %p1886_p4  ;;  %p1893_p13 = por %p1892_p1, %p1891_p10 }
  0x31   : > { %p1894_p3 = pnand %p1893_p13, %p1887_p7 }
  0x33   : > { %1897 = shalt.err (!%p1894_p3)
}
  0x34   : > { %s1988_s10 = smov 128   ;;  %s1989_s29 = smov 8  }
  0x35   : > { %1713 = dma.hbm_to_vmem [thread:$0]  (!%p2093_p0), %s193_s7, 4096, %s195_s19, %s184_s21, %s1988_s10, %s1988_s10, %s1989_s29  }
  0x36   : > { %206 = sbr.rel (%p2114_p5) target bundleno = 467 (0x1d3), region = 28  ;;  %s2129_s28 = sand.u32 (!%p2114_p5), 1, %s1966_s13  }
  0x37   : > { %s1528_s22 = sshll.u32 (!%p2114_p5), %s2129_s28, 8  ;;  %s209_s23 = scalar_lea.sflag (!%p2114_p5), [#allocation4], %s2129_s28 }
  0x38   : > { %s2133_s0 = scalar_lea.vmem (!%p2114_p5), [#allocation3], %s1528_s22 }
  0x3b   : > { %1949 = dma.done.wait (%p2062_p8), %s209_s23, 4096  }
  0x3c   : > { %1951 = vsyncadd (%p2062_p8), %s209_s23, 4294963200  ;;  %s218_s9 = scalar_lea.sflag [#allocation7], %s2129_s28  ;;  %s2140_s4 = scalar_lea.vmem [#allocation6], %s1528_s22 }
  0x3d   : > { %1953 = dma.done.wait (%p2062_p8), %s218_s9, 4096  }
  0x3e   : > { %1955 = vsyncadd (%p2062_p8), %s218_s9, 4294963200  ;;  %vm268_vm0 = vcmask 7168   ;;  %v1990_v0 = vmov 0.0   ;;  %v333_v1 = vld [vmem:[%s2133_s0] sm:$0xff]  ;;  %v334_v2 = vld [vmem:[%s2133_s0 + $0x8] sm:$0xff]  ;;  %s1531_s24 = sshll.u32 %s1974_s15, 5 }
  0x3f   : > { %271 = vst.msk [vmem:[#allocation2 + $0x10] sm:$0xff] %vm268_vm0, %v1990_v0  ;;  %269 = vst.msk [vmem:[#allocation2] sm:$0xff] %vm268_vm0, %v1990_v0  ;;  %v335_v3 = vld [vmem:[%s2133_s0 + $0x10] sm:$0xff]  ;;  %v336_v4 = vld [vmem:[%s2133_s0 + $0x18] sm:$0xff]  ;;  %v373_v5 = vunpack.c.2.s8 %v333_v1  ;;  %v374_v6 = vunpack.c.2.s8 %v334_v2  ;;  %v365_v8 = vunpack.c.0.s8 %v333_v1  ;;  %v366_v10 = vunpack.c.0.s8 %v334_v2  ;;  %p2384_p8 = scmp.lt.s32.totalorder %s1531_s24, 63  ;;  %s1530_s21 = sshll.u32 %s2129_s28, 7 }
  0x40   : > { %270 = vst.msk [vmem:[#allocation2 + $0x8] sm:$0xff] %vm268_vm0, %v1990_v0  ;;  %272 = vst.msk [vmem:[#allocation2 + $0x18] sm:$0xff] %vm268_vm0, %v1990_v0  ;;  %v375_v7 = vunpack.c.2.s8 %v335_v3  ;;  %v376_v9 = vunpack.c.2.s8 %v336_v4  ;;  %v367_v11 = vunpack.c.0.s8 %v335_v3  ;;  %v368_v12 = vunpack.c.0.s8 %v336_v4  ;;  %v2183_v33 = vld [vmem:[%s2133_s0 + $0x20] sm:$0xff]  ;;  %v2186_v38 = vld [vmem:[%s2133_s0 + $0x28] sm:$0xff]  ;;  %s2493_s6 = scalar_lea.vmem [#allocation8], %s1530_s21  ;;  %s1605_s8 = sshll.u32 %s1974_s15, 11 }
  0x41   : > { %273 = vst.msk [vmem:[#allocation2 + $0x20] sm:$0xff] %vm268_vm0, %v1990_v0  ;;  %274 = vst.msk [vmem:[#allocation2 + $0x28] sm:$0xff] %vm268_vm0, %v1990_v0  ;;  %v501_v13 = vcvt.s32.f32 %v373_v5  ;;  %v502_v14 = vcvt.s32.f32 %v374_v6  ;;  %v493_v16 = vcvt.s32.f32 %v365_v8  ;;  %v494_v18 = vcvt.s32.f32 %v366_v10  ;;  %v2189_v39 = vld [vmem:[%s2133_s0 + $0x30] sm:$0xff]  ;;  %v2192_v44 = vld [vmem:[%s2133_s0 + $0x38] sm:$0xff]  ;;  %s2617_s24 = smov (!%p2384_p8, %s1531_s24), 63  ;;  %s1380_s30 = sshll.u32 %s2493_s6, 4  ;;  %s2547_s30 = int_to_ptr.vmem [resolvable:$true] %s1380_s30 }
  0x42   : > { %275 = vst.msk [vmem:[#allocation2 + $0x30] sm:$0xff] %vm268_vm0, %v1990_v0  ;;  %276 = vst.msk [vmem:[#allocation2 + $0x38] sm:$0xff] %vm268_vm0, %v1990_v0  ;;  %v503_v15 = vcvt.s32.f32 %v375_v7  ;;  %v504_v17 = vcvt.s32.f32 %v376_v9  ;;  %v495_v19 = vcvt.s32.f32 %v367_v11  ;;  %v496_v20 = vcvt.s32.f32 %v368_v12  ;;  %v2201_v57 = vld [vmem:[%s2133_s0 + $0x40] sm:$0xff]  ;;  %v2204_v62 = vld [vmem:[%s2133_s0 + $0x48] sm:$0xff]  ;;  %s1532_s7 = sshll.u32 %s2617_s24, 3  ;;  %s2545_s22 = scalar_lea.hbm %s2598_s2, %s1605_s8 }
  0x43   : > { %277 = vst.msk [vmem:[#allocation2 + $0x40] sm:$0xff] %vm268_vm0, %v1990_v0  ;;  %278 = vst.msk [vmem:[#allocation2 + $0x48] sm:$0xff] %vm268_vm0, %v1990_v0  ;;  %v631_v21 = vadd.f32 %v502_v14, %v501_v13  ;;  %v377_v22 = vunpack.c.3.s8 %v333_v1  ;;  %v378_v23 = vunpack.c.3.s8 %v334_v2  ;;  %v379_v24 = vunpack.c.3.s8 %v335_v3  ;;  %v2207_v63 = vld [vmem:[%s2133_s0 + $0x50] sm:$0xff]  ;;  %s2397_s19 = scalar_lea.vmem %s2599_s3, %s1532_s7  ;;  %s1362_s23 = scalar_lea.sflag [#allocation5], %s2129_s28 }
  0x44   : > { %279 = vst.msk [vmem:[#allocation2 + $0x50] sm:$0xff] %vm268_vm0, %v1990_v0  ;;  %280 = vst.msk [vmem:[#allocation2 + $0x58] sm:$0xff] %vm268_vm0, %v1990_v0  ;;  %v621_v25 = vadd.f32 %v494_v18, %v493_v16  ;;  %v380_v26 = vunpack.c.3.s8 %v336_v4  ;;  %v369_v27 = vunpack.c.1.s8 %v333_v1  ;;  %v370_v28 = vunpack.c.1.s8 %v334_v2  ;;  %s1992_s15 = smov [#allocation8]  }
  0x45   : > { %281 = vst.msk [vmem:[#allocation2 + $0x60] sm:$0xff] %vm268_vm0, %v1990_v0  ;;  %282 = vst.msk [vmem:[#allocation2 + $0x68] sm:$0xff] %vm268_vm0, %v1990_v0  ;;  %v632_v29 = vadd.f32 %v631_v21, %v503_v15  ;;  %v505_v30 = vcvt.s32.f32 %v377_v22  ;;  %v506_v31 = vcvt.s32.f32 %v378_v23  ;;  %v507_v32 = vcvt.s32.f32 %v379_v24  ;;  %s1902_s9 = sshll.u32 %s1992_s15, 4  ;;  %s1903_s9 = int_to_ptr.vmem [resolvable:$false] %s1902_s9 }
  0x46   : > { %283 = vst.msk [vmem:[#allocation2 + $0x70] sm:$0xff] %vm268_vm0, %v1990_v0  ;;  %284 = vst.msk [vmem:[#allocation2 + $0x78] sm:$0xff] %vm268_vm0, %v1990_v0  ;;  %v622_v34 = vadd.f32 %v621_v25, %v495_v19  ;;  %v508_v35 = vcvt.s32.f32 %v380_v26  ;;  %v371_v36 = vunpack.c.1.s8 %v335_v3  ;;  %v372_v37 = vunpack.c.1.s8 %v336_v4  ;;  %v2212_v4 = vld [vmem:[%s2133_s0 + $0x58] sm:$0xff]  ;;  %p1905_p6 = scmp.lt.s32.totalorder %s2547_s30, %s1903_s9 }
  0x47   : > { %285 = vst.msk [vmem:[#allocation2 + $0x80] sm:$0xff] %vm268_vm0, %v1990_v0  ;;  %286 = vst.msk [vmem:[#allocation2 + $0x88] sm:$0xff] %vm268_vm0, %v1990_v0  ;;  %v633_v40 = vadd.f32 %v632_v29, %v504_v17  ;;  %v636_v41 = vadd.f32 %v506_v31, %v505_v30  ;;  %v497_v42 = vcvt.s32.f32 %v369_v27  ;;  %v498_v43 = vcvt.s32.f32 %v370_v28  ;;  %v2223_v29 = vld [vmem:[%s2133_s0 + $0x60] sm:$0xff] }
  0x48   : > { %287 = vst.msk [vmem:[#allocation2 + $0x90] sm:$0xff] %vm268_vm0, %v1990_v0  ;;  %288 = vst.msk [vmem:[#allocation2 + $0x98] sm:$0xff] %vm268_vm0, %v1990_v0  ;;  %v623_v45 = vadd.f32 %v622_v34, %v496_v20  ;;  %v499_v46 = vcvt.s32.f32 %v371_v36  ;;  %v500_v47 = vcvt.s32.f32 %v372_v37  ;;  %v385_v48 = vunpack.c.1.s8 %v2183_v33 }
  0x49   : > { %289 = vst.msk [vmem:[#allocation2 + $0xa0] sm:$0xff] %vm268_vm0, %v1990_v0  ;;  %290 = vst.msk [vmem:[#allocation2 + $0xa8] sm:$0xff] %vm268_vm0, %v1990_v0  ;;  %634 = vadd.xlane.f32.xlu1 %v633_v40  ;;  %v637_v49 = vadd.f32 %v636_v41, %v507_v32  ;;  %v626_v50 = vadd.f32 %v498_v43, %v497_v42  ;;  %v386_v51 = vunpack.c.1.s8 %v2186_v38  ;;  %v387_v52 = vunpack.c.1.s8 %v2189_v39  ;;  %v2232_v42 = vld [vmem:[%s2133_s0 + $0x70] sm:$0xff]  ;;  %v2235_v43 = vld [vmem:[%s2133_s0 + $0x78] sm:$0xff] }
  0x4a   : > { %291 = vst.msk [vmem:[#allocation2 + $0xb0] sm:$0xff] %vm268_vm0, %v1990_v0  ;;  %292 = vst.msk [vmem:[#allocation2 + $0xb8] sm:$0xff] %vm268_vm0, %v1990_v0  ;;  %624 = vadd.xlane.f32.xlu0 %v623_v45  ;;  %v388_v53 = vunpack.c.1.s8 %v2192_v44  ;;  %v513_v54 = vcvt.s32.f32 %v385_v48  ;;  %v393_v55 = vunpack.c.3.s8 %v2183_v33  ;;  %v394_v56 = vunpack.c.3.s8 %v2186_v38 }
  0x4b   : > { %293 = vst.msk [vmem:[#allocation2 + $0xc0] sm:$0xff] %vm268_vm0, %v1990_v0  ;;  %294 = vst.msk [vmem:[#allocation2 + $0xc8] sm:$0xff] %vm268_vm0, %v1990_v0  ;;  %v638_v58 = vadd.f32 %v637_v49, %v508_v35  ;;  %v627_v59 = vadd.f32 %v626_v50, %v499_v46  ;;  %v514_v60 = vcvt.s32.f32 %v386_v51  ;;  %v515_v61 = vcvt.s32.f32 %v387_v52  ;;  %v2228_v35 = vld [vmem:[%s2133_s0 + $0x68] sm:$0xff] }
  0x4c   : > { %295 = vst.msk [vmem:[#allocation2 + $0xd0] sm:$0xff] %vm268_vm0, %v1990_v0  ;;  %296 = vst.msk [vmem:[#allocation2 + $0xd8] sm:$0xff] %vm268_vm0, %v1990_v0  ;;  %v395_v1 = vunpack.c.3.s8 %v2189_v39  ;;  %v396_v2 = vunpack.c.3.s8 %v2192_v44  ;;  %v521_v3 = vcvt.s32.f32 %v393_v55  ;;  %v522_v7 = vcvt.s32.f32 %v394_v56 }
  0x4d   : > { %297 = vst.msk [vmem:[#allocation2 + $0xe0] sm:$0xff] %vm268_vm0, %v1990_v0  ;;  %298 = vst.msk [vmem:[#allocation2 + $0xe8] sm:$0xff] %vm268_vm0, %v1990_v0  ;;  %639 = vadd.xlane.f32.xlu1 %v638_v58  ;;  %v628_v5 = vadd.f32 %v627_v59, %v500_v47  ;;  %v646_v6 = vadd.f32 %v514_v60, %v513_v54  ;;  %v401_v8 = vunpack.c.1.s8 %v2201_v57  ;;  %v402_v11 = vunpack.c.1.s8 %v2204_v62 }
  0x4e   : > { %299 = vst.msk [vmem:[#allocation2 + $0xf0] sm:$0xff] %vm268_vm0, %v1990_v0  ;;  %300 = vst.msk [vmem:[#allocation2 + $0xf8] sm:$0xff] %vm268_vm0, %v1990_v0  ;;  %v516_v0 = vcvt.s32.f32 %v388_v53  ;;  %v523_v9 = vcvt.s32.f32 %v395_v1  ;;  %v524_v10 = vcvt.s32.f32 %v396_v2  ;;  %v403_v12 = vunpack.c.1.s8 %v2207_v63 }
  0x4f   : > { %629 = vadd.xlane.f32.xlu0 %v628_v5  ;;  %v647_v13 = vadd.f32 %v646_v6, %v515_v61  ;;  %v656_v14 = vadd.f32 %v522_v7, %v521_v3  ;;  %v404_v15 = vunpack.c.1.s8 %v2212_v4  ;;  %v529_v16 = vcvt.s32.f32 %v401_v8 }
  0x50   : > { %v530_v17 = vcvt.s32.f32 %v402_v11  ;;  %v531_v18 = vcvt.s32.f32 %v403_v12  ;;  %v381_v19 = vunpack.c.0.s8 %v2183_v33  ;;  %v382_v20 = vunpack.c.0.s8 %v2186_v38  ;;  %v2249_v12 = vld [vmem:[%s2133_s0 + $0x80] sm:$0xff] }
  0x51   : > { %v648_v21 = vadd.f32 %v647_v13, %v516_v0  ;;  %v657_v22 = vadd.f32 %v656_v14, %v523_v9  ;;  %v532_v23 = vcvt.s32.f32 %v404_v15  ;;  %v383_v24 = vunpack.c.0.s8 %v2189_v39  ;;  %v2252_v13 = vld [vmem:[%s2133_s0 + $0x88] sm:$0xff] }
  0x52   : > { %v666_v25 = vadd.f32 %v530_v17, %v529_v16  ;;  %v384_v26 = vunpack.c.0.s8 %v2192_v44  ;;  %v509_v27 = vcvt.s32.f32 %v381_v19  ;;  %v510_v28 = vcvt.s32.f32 %v382_v20  ;;  %v2256_v16 = vld [vmem:[%s2133_s0 + $0x90] sm:$0xff]  ;;  %v2260_v20 = vld [vmem:[%s2133_s0 + $0x98] sm:$0xff] }
  0x53   : > { %649 = vadd.xlane.f32.xlu1 %v648_v21  ;;  %v658_v30 = vadd.f32 %v657_v22, %v524_v10  ;;  %v511_v31 = vcvt.s32.f32 %v383_v24  ;;  %v409_v32 = vunpack.c.3.s8 %v2201_v57  ;;  %v410_v34 = vunpack.c.3.s8 %v2204_v62 }
  0x54   : > { %v667_v36 = vadd.f32 %v666_v25, %v531_v18  ;;  %v512_v37 = vcvt.s32.f32 %v384_v26  ;;  %v641_v40 = vadd.f32 %v510_v28, %v509_v27  ;;  %v411_v41 = vunpack.c.3.s8 %v2207_v63 }
  0x55   : > { %v412_v45 = vunpack.c.3.s8 %v2212_v4  ;;  %v537_v46 = vcvt.s32.f32 %v409_v32  ;;  %v538_v47 = vcvt.s32.f32 %v410_v34  ;;  %v417_v48 = vunpack.c.1.s8 %v2223_v29 }
  0x56   : > { %v668_v49 = vadd.f32 %v667_v36, %v532_v23  ;;  %v642_v50 = vadd.f32 %v641_v40, %v511_v31  ;;  %v539_v51 = vcvt.s32.f32 %v411_v41  ;;  %v418_v52 = vunpack.c.1.s8 %v2228_v35 }
  0x57   : > { %659 = vadd.xlane.f32.xlu1 %v658_v30  ;;  %v540_v53 = vcvt.s32.f32 %v412_v45  ;;  %v676_v54 = vadd.f32 %v538_v47, %v537_v46  ;;  %v419_v55 = vunpack.c.1.s8 %v2232_v42  ;;  %v420_v56 = vunpack.c.1.s8 %v2235_v43 }
  0x58   : > { %v643_v58 = vadd.f32 %v642_v50, %v512_v37  ;;  %v545_v59 = vcvt.s32.f32 %v417_v48  ;;  %v546_v60 = vcvt.s32.f32 %v418_v52  ;;  %v389_v61 = vunpack.c.2.s8 %v2183_v33 }
  0x59   : > { %v677_v0 = vadd.f32 %v676_v54, %v539_v51  ;;  %v547_v1 = vcvt.s32.f32 %v419_v55  ;;  %v548_v2 = vcvt.s32.f32 %v420_v56  ;;  %v390_v3 = vunpack.c.2.s8 %v2186_v38 }
  0x5a   : > { %644 = vadd.xlane.f32.xlu0 %v643_v58  ;;  %v686_v5 = vadd.f32 %v546_v60, %v545_v59  ;;  %v391_v6 = vunpack.c.2.s8 %v2189_v39  ;;  %v392_v7 = vunpack.c.2.s8 %v2192_v44  ;;  %v517_v8 = vcvt.s32.f32 %v389_v61 }
  0x5b   : > { %669 = vadd.xlane.f32.xlu1 %v668_v49  ;;  %v678_v9 = vadd.f32 %v677_v0, %v540_v53  ;;  %v518_v10 = vcvt.s32.f32 %v390_v3  ;;  %v425_v33 = vunpack.c.3.s8 %v2223_v29  ;;  %v426_v11 = vunpack.c.3.s8 %v2228_v35 }
  0x5c   : > { %v687_v38 = vadd.f32 %v686_v5, %v547_v1  ;;  %v519_v14 = vcvt.s32.f32 %v391_v6  ;;  %v520_v15 = vcvt.s32.f32 %v392_v7  ;;  %v427_v39 = vunpack.c.3.s8 %v2232_v42  ;;  %v2277_v5 = vld [vmem:[%s2133_s0 + $0xa0] sm:$0xff]  ;;  %v2280_v6 = vld [vmem:[%s2133_s0 + $0xa8] sm:$0xff] }
  0x5d   : > { %v651_v44 = vadd.f32 %v518_v10, %v517_v8  ;;  %v428_v17 = vunpack.c.3.s8 %v2235_v43  ;;  %v553_v18 = vcvt.s32.f32 %v425_v33  ;;  %v554_v19 = vcvt.s32.f32 %v426_v11  ;;  %v2284_v33 = vld [vmem:[%s2133_s0 + $0xb0] sm:$0xff] }
  0x5e   : > { %v688_v21 = vadd.f32 %v687_v38, %v548_v2  ;;  %v555_v22 = vcvt.s32.f32 %v427_v39  ;;  %v433_v23 = vunpack.c.1.s8 %v2249_v12  ;;  %v434_v24 = vunpack.c.1.s8 %v2252_v13 }
  0x5f   : > { %679 = vadd.xlane.f32.xlu1 %v678_v9  ;;  %v652_v25 = vadd.f32 %v651_v44, %v519_v14  ;;  %v556_v26 = vcvt.s32.f32 %v428_v17  ;;  %v696_v27 = vadd.f32 %v554_v19, %v553_v18  ;;  %v435_v28 = vunpack.c.1.s8 %v2256_v16 }
  0x60   : > { %v436_v30 = vunpack.c.1.s8 %v2260_v20  ;;  %v561_v31 = vcvt.s32.f32 %v433_v23  ;;  %v562_v32 = vcvt.s32.f32 %v434_v24  ;;  %v397_v34 = vunpack.c.0.s8 %v2201_v57 }
  0x61   : > { %v653_v36 = vadd.f32 %v652_v25, %v520_v15  ;;  %v697_v37 = vadd.f32 %v696_v27, %v555_v22  ;;  %v563_v40 = vcvt.s32.f32 %v435_v28  ;;  %v398_v41 = vunpack.c.0.s8 %v2204_v62 }
  0x62   : > { %v564_v45 = vcvt.s32.f32 %v436_v30  ;;  %v706_v46 = vadd.f32 %v562_v32, %v561_v31  ;;  %v399_v47 = vunpack.c.0.s8 %v2207_v63  ;;  %v400_v48 = vunpack.c.0.s8 %v2212_v4 }
  0x63   : > { %689 = vadd.xlane.f32.xlu1 %v688_v21  ;;  %654 = vadd.xlane.f32.xlu0 %v653_v36  ;;  %v698_v49 = vadd.f32 %v697_v37, %v556_v26  ;;  %v525_v50 = vcvt.s32.f32 %v397_v34  ;;  %v526_v51 = vcvt.s32.f32 %v398_v41  ;;  %v441_v52 = vunpack.c.3.s8 %v2249_v12 }
  0x64   : > { %v707_v53 = vadd.f32 %v706_v46, %v563_v40  ;;  %v527_v54 = vcvt.s32.f32 %v399_v47  ;;  %v528_v55 = vcvt.s32.f32 %v400_v48  ;;  %v442_v56 = vunpack.c.3.s8 %v2252_v13 }
  0x65   : > { %v661_v58 = vadd.f32 %v526_v51, %v525_v50  ;;  %v443_v59 = vunpack.c.3.s8 %v2256_v16  ;;  %v444_v60 = vunpack.c.3.s8 %v2260_v20  ;;  %v569_v61 = vcvt.s32.f32 %v441_v52 }
  0x66   : > { %v708_v0 = vadd.f32 %v707_v53, %v564_v45  ;;  %v570_v1 = vcvt.s32.f32 %v442_v56  ;;  %v405_v2 = vunpack.c.2.s8 %v2201_v57  ;;  %v406_v3 = vunpack.c.2.s8 %v2204_v62  ;;  %v2288_v57 = vld [vmem:[%s2133_s0 + $0xb8] sm:$0xff] }
  0x67   : > { %699 = vadd.xlane.f32.xlu1 %v698_v49  ;;  %v662_v7 = vadd.f32 %v661_v58, %v527_v54  ;;  %v571_v8 = vcvt.s32.f32 %v443_v59  ;;  %v572_v9 = vcvt.s32.f32 %v444_v60  ;;  %v407_v10 = vunpack.c.2.s8 %v2207_v63  ;;  %v2305_v58 = vld [vmem:[%s2133_s0 + $0xc0] sm:$0xff]  ;;  %v2308_v59 = vld [vmem:[%s2133_s0 + $0xc8] sm:$0xff] }
  0x68   : > { %v716_v11 = vadd.f32 %v570_v1, %v569_v61  ;;  %v408_v38 = vunpack.c.2.s8 %v2212_v4  ;;  %v533_v14 = vcvt.s32.f32 %v405_v2  ;;  %v534_v15 = vcvt.s32.f32 %v406_v3  ;;  %v2312_v2 = vld [vmem:[%s2133_s0 + $0xd0] sm:$0xff] }
  0x69   : > { %v663_v62 = vadd.f32 %v662_v7, %v528_v55  ;;  %v535_v39 = vcvt.s32.f32 %v407_v10  ;;  %v449_v44 = vunpack.c.1.s8 %v2277_v5  ;;  %v450_v17 = vunpack.c.1.s8 %v2280_v6 }
  0x6a   : > { %v717_v18 = vadd.f32 %v716_v11, %v571_v8  ;;  %v536_v19 = vcvt.s32.f32 %v408_v38  ;;  %v671_v21 = vadd.f32 %v534_v15, %v533_v14  ;;  %v451_v63 = vunpack.c.1.s8 %v2284_v33 }
  0x6b   : > { %709 = vadd.xlane.f32.xlu1 %v708_v0  ;;  %664 = vadd.xlane.f32.xlu0 %v663_v62  ;;  %v452_v22 = vunpack.c.1.s8 %v2288_v57  ;;  %v577_v4 = vcvt.s32.f32 %v449_v44  ;;  %v578_v23 = vcvt.s32.f32 %v450_v17  ;;  %v413_v24 = vunpack.c.0.s8 %v2223_v29 }
  0x6c   : > { %v718_v25 = vadd.f32 %v717_v18, %v572_v9  ;;  %v672_v26 = vadd.f32 %v671_v21, %v535_v39  ;;  %v579_v27 = vcvt.s32.f32 %v451_v63  ;;  %v414_v28 = vunpack.c.0.s8 %v2228_v35 }
  0x6d   : > { %v580_v30 = vcvt.s32.f32 %v452_v22  ;;  %v726_v31 = vadd.f32 %v578_v23, %v577_v4  ;;  %v415_v32 = vunpack.c.0.s8 %v2232_v42  ;;  %v416_v34 = vunpack.c.0.s8 %v2235_v43 }
  0x6e   : > { %v673_v36 = vadd.f32 %v672_v26, %v536_v19  ;;  %v541_v37 = vcvt.s32.f32 %v413_v24  ;;  %v542_v40 = vcvt.s32.f32 %v414_v28  ;;  %v457_v41 = vunpack.c.3.s8 %v2277_v5 }
  0x6f   : > { %719 = vadd.xlane.f32.xlu1 %v718_v25  ;;  %v727_v45 = vadd.f32 %v726_v31, %v579_v27  ;;  %v543_v46 = vcvt.s32.f32 %v415_v32  ;;  %v544_v47 = vcvt.s32.f32 %v416_v34  ;;  %v458_v48 = vunpack.c.3.s8 %v2280_v6 }
  0x70   : > { %674 = vadd.xlane.f32.xlu0 %v673_v36  ;;  %v681_v49 = vadd.f32 %v542_v40, %v541_v37  ;;  %v459_v50 = vunpack.c.3.s8 %v2284_v33  ;;  %v460_v51 = vunpack.c.3.s8 %v2288_v57  ;;  %v585_v52 = vcvt.s32.f32 %v457_v41 }
  0x71   : > { %v728_v53 = vadd.f32 %v727_v45, %v580_v30  ;;  %v586_v54 = vcvt.s32.f32 %v458_v48  ;;  %v421_v55 = vunpack.c.2.s8 %v2223_v29  ;;  %v422_v56 = vunpack.c.2.s8 %v2228_v35  ;;  %v2316_v29 = vld [vmem:[%s2133_s0 + $0xd8] sm:$0xff] }
  0x72   : > { %v682_v60 = vadd.f32 %v681_v49, %v543_v46  ;;  %v587_v61 = vcvt.s32.f32 %v459_v50  ;;  %v588_v0 = vcvt.s32.f32 %v460_v51  ;;  %v423_v1 = vunpack.c.2.s8 %v2232_v42  ;;  %v2333_v49 = vld [vmem:[%s2133_s0 + $0xe0] sm:$0xff]  ;;  %v2336_v50 = vld [vmem:[%s2133_s0 + $0xe8] sm:$0xff] }
  0x73   : > { %729 = vadd.xlane.f32.xlu1 %v728_v53  ;;  %v736_v3 = vadd.f32 %v586_v54, %v585_v52  ;;  %v424_v7 = vunpack.c.2.s8 %v2235_v43  ;;  %v549_v8 = vcvt.s32.f32 %v421_v55  ;;  %v550_v9 = vcvt.s32.f32 %v422_v56  ;;  %v2340_v55 = vld [vmem:[%s2133_s0 + $0xf0] sm:$0xff] }
  0x74   : > { %v683_v35 = vadd.f32 %v682_v60, %v544_v47  ;;  %v551_v10 = vcvt.s32.f32 %v423_v1  ;;  %v465_v11 = vunpack.c.1.s8 %v2305_v58  ;;  %v466_v38 = vunpack.c.1.s8 %v2308_v59 }
  0x75   : > { %v737_v14 = vadd.f32 %v736_v3, %v587_v61  ;;  %v552_v15 = vcvt.s32.f32 %v424_v7  ;;  %v691_v62 = vadd.f32 %v550_v9, %v549_v8  ;;  %v467_v42 = vunpack.c.1.s8 %v2312_v2 }
  0x76   : > { %684 = vadd.xlane.f32.xlu0 %v683_v35  ;;  %v468_v39 = vunpack.c.1.s8 %v2316_v29  ;;  %v593_v44 = vcvt.s32.f32 %v465_v11  ;;  %v594_v43 = vcvt.s32.f32 %v466_v38  ;;  %v429_v17 = vunpack.c.0.s8 %v2249_v12 }
  0x77   : > { %v738_v18 = vadd.f32 %v737_v14, %v588_v0  ;;  %v692_v19 = vadd.f32 %v691_v62, %v551_v10  ;;  %v595_v21 = vcvt.s32.f32 %v467_v42  ;;  %v430_v63 = vunpack.c.0.s8 %v2252_v13 }
  0x78   : > { %v596_v22 = vcvt.s32.f32 %v468_v39  ;;  %v746_v4 = vadd.f32 %v594_v43, %v593_v44  ;;  %v431_v23 = vunpack.c.0.s8 %v2256_v16  ;;  %v432_v24 = vunpack.c.0.s8 %v2260_v20 }
  0x79   : > { %739 = vadd.xlane.f32.xlu1 %v738_v18  ;;  %v693_v25 = vadd.f32 %v692_v19, %v552_v15  ;;  %v557_v26 = vcvt.s32.f32 %v429_v17  ;;  %v558_v27 = vcvt.s32.f32 %v430_v63  ;;  %v473_v28 = vunpack.c.3.s8 %v2305_v58 }
  0x7a   : > { %v747_v30 = vadd.f32 %v746_v4, %v595_v21  ;;  %v559_v31 = vcvt.s32.f32 %v431_v23  ;;  %v560_v32 = vcvt.s32.f32 %v432_v24  ;;  %v474_v34 = vunpack.c.3.s8 %v2308_v59 }
  0x7b   : > { %694 = vadd.xlane.f32.xlu0 %v693_v25  ;;  %v701_v36 = vadd.f32 %v558_v27, %v557_v26  ;;  %v475_v37 = vunpack.c.3.s8 %v2312_v2  ;;  %v476_v40 = vunpack.c.3.s8 %v2316_v29  ;;  %v601_v41 = vcvt.s32.f32 %v473_v28 }
  0x7c   : > { %v748_v45 = vadd.f32 %v747_v30, %v596_v22  ;;  %v602_v46 = vcvt.s32.f32 %v474_v34  ;;  %v437_v47 = vunpack.c.2.s8 %v2249_v12  ;;  %v438_v48 = vunpack.c.2.s8 %v2252_v13  ;;  %v2344_v12 = vld [vmem:[%s2133_s0 + $0xf8] sm:$0xff]  ;;  %s1898_s0 = scalar_lea.vmem %s2547_s30, 2048 }
  0x7d   : > { %v702_v51 = vadd.f32 %v701_v36, %v559_v31  ;;  %v603_v52 = vcvt.s32.f32 %v475_v37  ;;  %v604_v53 = vcvt.s32.f32 %v476_v40  ;;  %v439_v54 = vunpack.c.2.s8 %v2256_v16  ;;  %p1899_p0 = scmp.ne.s32.totalorder %s2547_s30, %s1898_s0 }
  0x7e   : > { %749 = vadd.xlane.f32.xlu1 %v748_v45  ;;  %v756_v56 = vadd.f32 %v602_v46, %v601_v41  ;;  %v440_v60 = vunpack.c.2.s8 %v2260_v20  ;;  %v565_v61 = vcvt.s32.f32 %v437_v47  ;;  %v566_v0 = vcvt.s32.f32 %v438_v48 }
  0x7f   : > { %v703_v13 = vadd.f32 %v702_v51, %v560_v32  ;;  %v567_v1 = vcvt.s32.f32 %v439_v54  ;;  %v481_v3 = vunpack.c.1.s8 %v2333_v49  ;;  %v482_v7 = vunpack.c.1.s8 %v2336_v50  ;;  %p1900_p2 = pnand %p1899_p0, %p2066_p9 }
  0x80   : > { %v757_v8 = vadd.f32 %v756_v56, %v603_v52  ;;  %v568_v9 = vcvt.s32.f32 %v440_v60  ;;  %v711_v35 = vadd.f32 %v566_v0, %v565_v61  ;;  %v483_v16 = vunpack.c.1.s8 %v2340_v55 }
  0x81   : > { %704 = vadd.xlane.f32.xlu0 %v703_v13  ;;  %v484_v10 = vunpack.c.1.s8 %v2344_v12  ;;  %v609_v11 = vcvt.s32.f32 %v481_v3  ;;  %v610_v20 = vcvt.s32.f32 %v482_v7  ;;  %v445_v38 = vunpack.c.0.s8 %v2277_v5  ;;  %p1901_p5 = pneg %p1900_p2 }
  0x82   : > { %v758_v14 = vadd.f32 %v757_v8, %v604_v53  ;;  %v712_v15 = vadd.f32 %v711_v35, %v567_v1  ;;  %v611_v62 = vcvt.s32.f32 %v483_v16  ;;  %v446_v42 = vunpack.c.0.s8 %v2280_v6 }
  0x83   : > { %v612_v39 = vcvt.s32.f32 %v484_v10  ;;  %v766_v44 = vadd.f32 %v610_v20, %v609_v11  ;;  %v447_v43 = vunpack.c.0.s8 %v2284_v33  ;;  %v448_v17 = vunpack.c.0.s8 %v2288_v57 }
  0x84   : > { %759 = vadd.xlane.f32.xlu1 %v758_v14  ;;  %v713_v18 = vadd.f32 %v712_v15, %v568_v9  ;;  %v573_v19 = vcvt.s32.f32 %v445_v38  ;;  %v574_v21 = vcvt.s32.f32 %v446_v42  ;;  %v489_v63 = vunpack.c.3.s8 %v2333_v49 }
  0x85   : > { %v767_v22 = vadd.f32 %v766_v44, %v611_v62  ;;  %v575_v4 = vcvt.s32.f32 %v447_v43  ;;  %v576_v23 = vcvt.s32.f32 %v448_v17  ;;  %v490_v24 = vunpack.c.3.s8 %v2336_v50 }
  0x86   : > { %714 = vadd.xlane.f32.xlu0 %v713_v18  ;;  %v721_v25 = vadd.f32 %v574_v21, %v573_v19  ;;  %v491_v26 = vunpack.c.3.s8 %v2340_v55  ;;  %v492_v27 = vunpack.c.3.s8 %v2344_v12  ;;  %v617_v28 = vcvt.s32.f32 %v489_v63 }
  0x87   : > { %v768_v30 = vadd.f32 %v767_v22, %v612_v39  ;;  %v618_v31 = vcvt.s32.f32 %v490_v24  ;;  %v453_v32 = vunpack.c.2.s8 %v2277_v5  ;;  %v454_v34 = vunpack.c.2.s8 %v2280_v6 }
  0x88   : > { %v722_v36 = vadd.f32 %v721_v25, %v575_v4  ;;  %v619_v37 = vcvt.s32.f32 %v491_v26  ;;  %v620_v40 = vcvt.s32.f32 %v492_v27  ;;  %v455_v41 = vunpack.c.2.s8 %v2284_v33 }
  0x89   : > { %769 = vadd.xlane.f32.xlu1 %v768_v30  ;;  %v776_v45 = vadd.f32 %v618_v31, %v617_v28  ;;  %v456_v46 = vunpack.c.2.s8 %v2288_v57  ;;  %v581_v47 = vcvt.s32.f32 %v453_v32  ;;  %v582_v48 = vcvt.s32.f32 %v454_v34  ;;  %v303_v32 = vld [vmem:[#allocation2 + $0x10] sm:$0xff]  ;;  %v301_v34 = vld [vmem:[#allocation2] sm:$0xff] }
  0x8a   : > { %v723_v51 = vadd.f32 %v722_v36, %v576_v23  ;;  %v583_v52 = vcvt.s32.f32 %v455_v41  ;;  %v461_v53 = vunpack.c.0.s8 %v2305_v58  ;;  %v462_v54 = vunpack.c.0.s8 %v2308_v59  ;;  %v304_v41 = vld [vmem:[#allocation2 + $0x18] sm:$0xff] }
  0x8b   : > { %v777_v5 = vadd.f32 %v776_v45, %v619_v37  ;;  %v584_v56 = vcvt.s32.f32 %v456_v46  ;;  %v731_v6 = vadd.f32 %v582_v48, %v581_v47  ;;  %v463_v60 = vunpack.c.0.s8 %v2312_v2  ;;  %v302_v46 = vld [vmem:[#allocation2 + $0x8] sm:$0xff] }
  0x8c   : > { %724 = vadd.xlane.f32.xlu0 %v723_v51  ;;  %v464_v33 = vunpack.c.0.s8 %v2316_v29  ;;  %v589_v61 = vcvt.s32.f32 %v461_v53  ;;  %v590_v0 = vcvt.s32.f32 %v462_v54  ;;  %v469_v57 = vunpack.c.2.s8 %v2305_v58 }
  0x8d   : > { %v778_v13 = vadd.f32 %v777_v5, %v620_v40  ;;  %v732_v1 = vadd.f32 %v731_v6, %v583_v52  ;;  %v591_v3 = vcvt.s32.f32 %v463_v60  ;;  %v470_v7 = vunpack.c.2.s8 %v2308_v59  ;;  %v306_v52 = vld [vmem:[#allocation2 + $0x28] sm:$0xff]  ;;  %v308_v60 = vld [vmem:[#allocation2 + $0x38] sm:$0xff] }
  0x8e   : > { %v592_v8 = vcvt.s32.f32 %v464_v33  ;;  %v741_v9 = vadd.f32 %v590_v0, %v589_v61  ;;  %v471_v35 = vunpack.c.2.s8 %v2312_v2  ;;  %v472_v16 = vunpack.c.2.s8 %v2316_v29 }
  0x8f   : > { %779 = vadd.xlane.f32.xlu1 %v778_v13  ;;  %v733_v10 = vadd.f32 %v732_v1, %v584_v56  ;;  %v597_v11 = vcvt.s32.f32 %v469_v57  ;;  %v598_v20 = vcvt.s32.f32 %v470_v7  ;;  %v477_v38 = vunpack.c.0.s8 %v2333_v49  ;;  %v305_v13 = vld [vmem:[#allocation2 + $0x20] sm:$0xff] }
  0x90   : > { %v742_v14 = vadd.f32 %v741_v9, %v591_v3  ;;  %v599_v15 = vcvt.s32.f32 %v471_v35  ;;  %v600_v58 = vcvt.s32.f32 %v472_v16  ;;  %v478_v62 = vunpack.c.0.s8 %v2336_v50  ;;  %v310_v3 = vld [vmem:[#allocation2 + $0x48] sm:$0xff] }
  0x91   : > { %734 = vadd.xlane.f32.xlu0 %v733_v10  ;;  %v751_v42 = vadd.f32 %v598_v20, %v597_v11  ;;  %v479_v59 = vunpack.c.0.s8 %v2340_v55  ;;  %v480_v39 = vunpack.c.0.s8 %v2344_v12  ;;  %v605_v2 = vcvt.s32.f32 %v477_v38  ;;  %v312_v11 = vld [vmem:[#allocation2 + $0x58] sm:$0xff] }
  0x92   : > { %v743_v44 = vadd.f32 %v742_v14, %v592_v8  ;;  %v606_v29 = vcvt.s32.f32 %v478_v62  ;;  %v485_v43 = vunpack.c.2.s8 %v2333_v49  ;;  %v486_v17 = vunpack.c.2.s8 %v2336_v50  ;;  %v307_v62 = vld [vmem:[#allocation2 + $0x30] sm:$0xff] }
  0x93   : > { %v752_v18 = vadd.f32 %v751_v42, %v599_v15  ;;  %v607_v19 = vcvt.s32.f32 %v479_v59  ;;  %v487_v21 = vunpack.c.2.s8 %v2340_v55  ;;  %v608_v63 = vcvt.s32.f32 %v480_v39 }
  0x94   : > { %v761_v22 = vadd.f32 %v606_v29, %v605_v2  ;;  %v613_v4 = vcvt.s32.f32 %v485_v43  ;;  %v614_v23 = vcvt.s32.f32 %v486_v17  ;;  %v488_v25 = vunpack.c.2.s8 %v2344_v12 }
  0x95   : > { %744 = vadd.xlane.f32.xlu0 %v743_v44  ;;  %v753_v24 = vadd.f32 %v752_v18, %v600_v58  ;;  %v615_v26 = vcvt.s32.f32 %v487_v21  ;;  %v1991_v30 = vmov 0   ;;  %v314_v58 = vld [vmem:[#allocation2 + $0x68] sm:$0xff] }
  0x96   : > { %v762_v27 = vadd.f32 %v761_v22, %v607_v19  ;;  %v771_v28 = vadd.f32 %v614_v23, %v613_v4  ;;  %1776 = vset.pattern.permute.xlu0 %v1991_v30  ;;  %1777 = vset.pattern.permute.xlu1 %v1991_v30  ;;  %v616_v50 = vcvt.s32.f32 %v488_v25  ;;  %v316_v19 = vld [vmem:[#allocation2 + $0x78] sm:$0xff] }
  0x98   : > { %v763_v49 = vadd.f32 %v762_v27, %v608_v63  ;;  %v772_v31 = vadd.f32 %v771_v28, %v615_v26  ;;  %v318_v26 = vld [vmem:[#allocation2 + $0x88] sm:$0xff]  ;;  %v309_v27 = vld [vmem:[#allocation2 + $0x40] sm:$0xff] }
  0x99   : > { %754 = vadd.xlane.f32.xlu0 %v753_v24 }
  0x9a   : > { %v773_v55 = vadd.f32 %v772_v31, %v616_v50 }
  0x9d   : > { %764 = vadd.xlane.f32.xlu0 %v763_v49 }
  0xa1   : > { %774 = vadd.xlane.f32.xlu0 %v773_v55 }
  0xd2   : > { %v635_v36 = vpop.xlane.xlu1 %634 }
  0xd3   : > { %v783_v37 = vadd.f32 %v635_v36, %v303_v32  ;;  %v625_v40 = vpop.xlane.xlu0 %624 }
  0xd4   : > { %v781_v12 = vadd.f32 %v625_v40, %v301_v34  ;;  %v320_v34 = vld [vmem:[#allocation2 + $0x98] sm:$0xff]  ;;  %v311_v40 = vld [vmem:[#allocation2 + $0x50] sm:$0xff] }
  0xd5   : > { %816 = vst.msk [vmem:[#allocation2 + $0x10] sm:$0xff] %vm268_vm0, %v783_v37 }
  0xd6   : > { %814 = vst.msk [vmem:[#allocation2] sm:$0xff] %vm268_vm0, %v781_v12  ;;  %v640_v45 = vpop.xlane.xlu1 %639 }
  0xd7   : > { %v784_v47 = vadd.f32 %v640_v45, %v304_v41 }
  0xd8   : > { %v630_v48 = vpop.xlane.xlu0 %629 }
  0xd9   : > { %817 = vst.msk [vmem:[#allocation2 + $0x18] sm:$0xff] %vm268_vm0, %v784_v47  ;;  %v782_v51 = vadd.f32 %v630_v48, %v302_v46 }
  0xdb   : > { %815 = vst.msk [vmem:[#allocation2 + $0x8] sm:$0xff] %vm268_vm0, %v782_v51 }
  0xdc   : > { %v650_v53 = vpop.xlane.xlu1 %649  ;;  %v851_v54 = vld [vmem:[#allocation2 + $0x10] sm:$0xff] }
  0xdd   : > { %v786_v5 = vadd.f32 %v650_v53, %v306_v52  ;;  %v849_v56 = vld [vmem:[#allocation2] sm:$0xff]  ;;  %v883_v6 = vadd.f32 1.0, %v851_v54  ;;  %v322_v52 = vld [vmem:[#allocation2 + $0xa8] sm:$0xff] }
  0xde   : > { %v881_v33 = vadd.f32 1.0, %v849_v56 }
  0xdf   : > { %819 = vst.msk [vmem:[#allocation2 + $0x28] sm:$0xff] %vm268_vm0, %v786_v5  ;;  %1778 = vrsqrt.f32 %v883_v6 }
  0xe0   : > { %v660_v61 = vpop.xlane.xlu1 %659  ;;  %1780 = vrsqrt.f32 %v881_v33  ;;  %v852_v0 = vld [vmem:[#allocation2 + $0x18] sm:$0xff] }
  0xe1   : > { %v788_v57 = vadd.f32 %v660_v61, %v308_v60  ;;  %v884_v1 = vadd.f32 1.0, %v852_v0  ;;  %v313_v60 = vld [vmem:[#allocation2 + $0x60] sm:$0xff] }
  0xe2   : > { %v850_v7 = vld [vmem:[#allocation2 + $0x8] sm:$0xff] }
  0xe3   : > { %821 = vst.msk [vmem:[#allocation2 + $0x38] sm:$0xff] %vm268_vm0, %v788_v57  ;;  %v645_v8 = vpop.xlane.xlu0 %644  ;;  %v882_v9 = vadd.f32 1.0, %v850_v7  ;;  %1782 = vrsqrt.f32 %v884_v1  ;;  %v324_v7 = vld [vmem:[#allocation2 + $0xb8] sm:$0xff] }
  0xe4   : > { %v670_v35 = vpop.xlane.xlu1 %669  ;;  %v785_v16 = vadd.f32 %v645_v8, %v305_v13 }
  0xe5   : > { %v790_v10 = vadd.f32 %v670_v35, %v310_v3  ;;  %1784 = vrsqrt.f32 %v882_v9  ;;  %v315_v35 = vld [vmem:[#allocation2 + $0x70] sm:$0xff] }
  0xe6   : > { %818 = vst.msk [vmem:[#allocation2 + $0x20] sm:$0xff] %vm268_vm0, %v785_v16  ;;  %v854_v20 = vld [vmem:[#allocation2 + $0x28] sm:$0xff] }
  0xe7   : > { %823 = vst.msk [vmem:[#allocation2 + $0x48] sm:$0xff] %vm268_vm0, %v790_v10  ;;  %v886_v38 = vadd.f32 1.0, %v854_v20 }
  0xe8   : > { %v680_v14 = vpop.xlane.xlu1 %679 }
  0xe9   : > { %v792_v15 = vadd.f32 %v680_v14, %v312_v11  ;;  %1786 = vrsqrt.f32 %v886_v38 }
  0xea   : > { %v856_v42 = vld [vmem:[#allocation2 + $0x38] sm:$0xff] }
  0xeb   : > { %825 = vst.msk [vmem:[#allocation2 + $0x58] sm:$0xff] %vm268_vm0, %v792_v15  ;;  %v888_v59 = vadd.f32 1.0, %v856_v42 }
  0xec   : > { %v1779_v39 = vpop.eup %1778  ;;  %v690_v2 = vpop.xlane.xlu1 %689 }
  0xed   : > { %v655_v44 = vpop.xlane.xlu0 %654  ;;  %v1781_v29 = vpop.eup %1780  ;;  %v794_v43 = vadd.f32 %v690_v2, %v314_v58  ;;  %947 = vst.msk [vmem:[%s2397_s19 + $0x10] sm:$0xff] %vm268_vm0, %v1779_v39  ;;  %v853_v18 = vld [vmem:[#allocation2 + $0x20] sm:$0xff]  ;;  %1788 = vrsqrt.f32 %v888_v59  ;;  %v326_v58 = vld [vmem:[#allocation2 + $0xc8] sm:$0xff] }
  0xee   : > { %v787_v17 = vadd.f32 %v655_v44, %v307_v62  ;;  %1011 = vperm.xlu0 %1776, %v1781_v29   ;;  %945 = vst.msk [vmem:[%s2397_s19] sm:$0xff] %vm268_vm0, %v1781_v29  ;;  %v885_v21 = vadd.f32 1.0, %v853_v18  ;;  %v858_v63 = vld [vmem:[#allocation2 + $0x48] sm:$0xff]  ;;  %v317_v29 = vld [vmem:[#allocation2 + $0x80] sm:$0xff] }
  0xef   : > { %827 = vst.msk [vmem:[#allocation2 + $0x68] sm:$0xff] %vm268_vm0, %v794_v43  ;;  %v890_v22 = vadd.f32 1.0, %v858_v63  ;;  %v328_v63 = vld [vmem:[#allocation2 + $0xd8] sm:$0xff] }
  0xf0   : > { %820 = vst.msk [vmem:[#allocation2 + $0x30] sm:$0xff] %vm268_vm0, %v787_v17  ;;  %v1783_v4 = vpop.eup %1782  ;;  %v700_v23 = vpop.xlane.xlu1 %699  ;;  %1790 = vrsqrt.f32 %v885_v21 }
  0xf1   : > { %v796_v24 = vadd.f32 %v700_v23, %v316_v19  ;;  %948 = vst.msk [vmem:[%s2397_s19 + $0x18] sm:$0xff] %vm268_vm0, %v1783_v4  ;;  %1792 = vrsqrt.f32 %v890_v22  ;;  %v319_v23 = vld [vmem:[#allocation2 + $0x90] sm:$0xff] }
  0xf2   : > { %v1785_v25 = vpop.eup %1784  ;;  %v860_v28 = vld [vmem:[#allocation2 + $0x58] sm:$0xff] }
  0xf3   : > { %829 = vst.msk [vmem:[#allocation2 + $0x78] sm:$0xff] %vm268_vm0, %v796_v24  ;;  %1016 = vperm.xlu1 %1777, %v1785_v25   ;;  %946 = vst.msk [vmem:[%s2397_s19 + $0x8] sm:$0xff] %vm268_vm0, %v1785_v25  ;;  %v892_v30 = vadd.f32 1.0, %v860_v28 }
  0xf4   : > { %v710_v49 = vpop.xlane.xlu1 %709  ;;  %v665_v50 = vpop.xlane.xlu0 %664 }
  0xf5   : > { %v798_v31 = vadd.f32 %v710_v49, %v318_v26  ;;  %v789_v55 = vadd.f32 %v665_v50, %v309_v27  ;;  %1794 = vrsqrt.f32 %v892_v30 }
  0xf6   : > { %v1787_v32 = vpop.eup %1786  ;;  %v862_v37 = vld [vmem:[#allocation2 + $0x68] sm:$0xff] }
  0xf7   : > { %v855_v36 = vld [vmem:[#allocation2 + $0x30] sm:$0xff]  ;;  %831 = vst.msk [vmem:[#allocation2 + $0x88] sm:$0xff] %vm268_vm0, %v798_v31  ;;  %822 = vst.msk [vmem:[#allocation2 + $0x40] sm:$0xff] %vm268_vm0, %v789_v55  ;;  %1021 = vperm.xlu1 %1777, %v1779_v39   ;;  %v894_v41 = vadd.f32 1.0, %v862_v37  ;;  %v330_v31 = vld [vmem:[#allocation2 + $0xe8] sm:$0xff] }
  0xf8   : > { %950 = vst.msk [vmem:[%s2397_s19 + $0x28] sm:$0xff] %vm268_vm0, %v1787_v32  ;;  %v887_v12 = vadd.f32 1.0, %v855_v36  ;;  %v720_v45 = vpop.xlane.xlu1 %719 }
  0xf9   : > { %v800_v46 = vadd.f32 %v720_v45, %v320_v34  ;;  %v675_v47 = vpop.xlane.xlu0 %674 }
  0xfa   : > { %1796 = vrsqrt.f32 %v887_v12  ;;  %v2414_v48 = vpop.eup %1788  ;;  %v791_v51 = vadd.f32 %v675_v47, %v311_v40  ;;  %v864_v53 = vld [vmem:[#allocation2 + $0x78] sm:$0xff]  ;;  %v321_v12 = vld [vmem:[#allocation2 + $0xa0] sm:$0xff] }
  0xfb   : > { %1798 = vrsqrt.f32 %v894_v41  ;;  %833 = vst.msk [vmem:[#allocation2 + $0x98] sm:$0xff] %vm268_vm0, %v800_v46  ;;  %1026 = vperm.xlu1 %1777, %v1783_v4   ;;  %952 = vst.msk [vmem:[%s2397_s19 + $0x38] sm:$0xff] %vm268_vm0, %v2414_v48  ;;  %v896_v54 = vadd.f32 1.0, %v864_v53 }
  0xfc   : > { %824 = vst.msk [vmem:[#allocation2 + $0x50] sm:$0xff] %vm268_vm0, %v791_v51  ;;  %v730_v5 = vpop.xlane.xlu1 %729  ;;  %v332_v51 = vld [vmem:[#allocation2 + $0xf8] sm:$0xff] }
  0xfd   : > { %v1791_v56 = vpop.eup %1790  ;;  %v802_v6 = vadd.f32 %v730_v5, %v322_v52  ;;  %1800 = vrsqrt.f32 %v896_v54  ;;  %v323_v54 = vld [vmem:[#allocation2 + $0xb0] sm:$0xff] }
  0xfe   : > { %v1793_v33 = vpop.eup %1792  ;;  %949 = vst.msk [vmem:[%s2397_s19 + $0x20] sm:$0xff] %vm268_vm0, %v1791_v56  ;;  %v857_v61 = vld [vmem:[#allocation2 + $0x40] sm:$0xff]  ;;  %v866_v0 = vld [vmem:[#allocation2 + $0x88] sm:$0xff] }
  0xff   : > { %835 = vst.msk [vmem:[#allocation2 + $0xa8] sm:$0xff] %vm268_vm0, %v802_v6  ;;  %v685_v57 = vpop.xlane.xlu0 %684  ;;  %1031 = vperm.xlu1 %1777, %v1791_v56   ;;  %954 = vst.msk [vmem:[%s2397_s19 + $0x48] sm:$0xff] %vm268_vm0, %v1793_v33  ;;  %1056 = vperm.xlu0 %1776, %v1793_v33   ;;  %v889_v13 = vadd.f32 1.0, %v857_v61  ;;  %v898_v1 = vadd.f32 1.0, %v866_v0 }
 0x100   : > { %v793_v3 = vadd.f32 %v685_v57, %v313_v60 }
 0x101   : > { %1802 = vrsqrt.f32 %v889_v13  ;;  %v325_v13 = vld [vmem:[#allocation2 + $0xc0] sm:$0xff] }
 0x102   : > { %v1795_v8 = vpop.eup %1794  ;;  %826 = vst.msk [vmem:[#allocation2 + $0x60] sm:$0xff] %vm268_vm0, %v793_v3  ;;  %v740_v9 = vpop.xlane.xlu1 %739  ;;  %1804 = vrsqrt.f32 %v898_v1  ;;  %v868_v16 = vld [vmem:[#allocation2 + $0x98] sm:$0xff] }
 0x103   : > { %v804_v10 = vadd.f32 %v740_v9, %v324_v7  ;;  %1036 = vperm.xlu1 %1777, %v1787_v32   ;;  %956 = vst.msk [vmem:[%s2397_s19 + $0x58] sm:$0xff] %vm268_vm0, %v1795_v8  ;;  %1066 = vperm.xlu0 %1776, %v1795_v8   ;;  %v859_v11 = vld [vmem:[#allocation2 + $0x50] sm:$0xff]  ;;  %v900_v20 = vadd.f32 1.0, %v868_v16 }
 0x104   : > { %v695_v38 = vpop.xlane.xlu0 %694  ;;  %v891_v14 = vadd.f32 1.0, %v859_v11  ;;  %v327_v16 = vld [vmem:[#allocation2 + $0xd0] sm:$0xff] }
 0x105   : > { %837 = vst.msk [vmem:[#allocation2 + $0xb8] sm:$0xff] %vm268_vm0, %v804_v10  ;;  %v795_v15 = vadd.f32 %v695_v38, %v315_v35  ;;  %1806 = vrsqrt.f32 %v900_v20 }
 0x106   : > { %1808 = vrsqrt.f32 %v891_v14  ;;  %v870_v42 = vld [vmem:[#allocation2 + $0xa8] sm:$0xff] }
 0x107   : > { %v1797_v62 = vpop.eup %1796  ;;  %828 = vst.msk [vmem:[#allocation2 + $0x70] sm:$0xff] %vm268_vm0, %v795_v15  ;;  %v750_v39 = vpop.xlane.xlu1 %749  ;;  %v902_v2 = vadd.f32 1.0, %v870_v42 }
 0x108   : > { %v1799_v59 = vpop.eup %1798  ;;  %951 = vst.msk [vmem:[%s2397_s19 + $0x30] sm:$0xff] %vm268_vm0, %v1797_v62  ;;  %1041 = vperm.xlu1 %1777, %v1797_v62   ;;  %v806_v44 = vadd.f32 %v750_v39, %v326_v58  ;;  %v329_v62 = vld [vmem:[#allocation2 + $0xe0] sm:$0xff] }
 0x109   : > { %958 = vst.msk [vmem:[%s2397_s19 + $0x68] sm:$0xff] %vm268_vm0, %v1799_v59  ;;  %1076 = vperm.xlu0 %1776, %v1799_v59   ;;  %v861_v43 = vld [vmem:[#allocation2 + $0x60] sm:$0xff]  ;;  %1810 = vrsqrt.f32 %v902_v2 }
 0x10a   : > { %v1801_v17 = vpop.eup %1800  ;;  %839 = vst.msk [vmem:[#allocation2 + $0xc8] sm:$0xff] %vm268_vm0, %v806_v44  ;;  %v705_v18 = vpop.xlane.xlu0 %704  ;;  %v893_v19 = vadd.f32 1.0, %v861_v43 }
 0x10b   : > { %v797_v21 = vadd.f32 %v705_v18, %v317_v29  ;;  %960 = vst.msk [vmem:[%s2397_s19 + $0x78] sm:$0xff] %vm268_vm0, %v1801_v17  ;;  %v331_v29 = vld [vmem:[#allocation2 + $0xf0] sm:$0xff] }
 0x10c   : > { %1046 = vperm.xlu1 %1777, %v2414_v48   ;;  %1812 = vrsqrt.f32 %v893_v19  ;;  %v872_v22 = vld [vmem:[#allocation2 + $0xb8] sm:$0xff] }
 0x10d   : > { %1086 = vperm.xlu0 %1776, %v1801_v17   ;;  %830 = vst.msk [vmem:[#allocation2 + $0x80] sm:$0xff] %vm268_vm0, %v797_v21  ;;  %v760_v4 = vpop.xlane.xlu1 %759  ;;  %v904_v24 = vadd.f32 1.0, %v872_v22 }
 0x10e   : > { %v1803_v25 = vpop.eup %1802  ;;  %v808_v26 = vadd.f32 %v760_v4, %v328_v63  ;;  %v863_v27 = vld [vmem:[#allocation2 + $0x70] sm:$0xff] }
 0x10f   : > { %v1805_v28 = vpop.eup %1804  ;;  %v715_v30 = vpop.xlane.xlu0 %714  ;;  %953 = vst.msk [vmem:[%s2397_s19 + $0x40] sm:$0xff] %vm268_vm0, %v1803_v25  ;;  %v895_v49 = vadd.f32 1.0, %v863_v27  ;;  %1814 = vrsqrt.f32 %v904_v24 }
 0x110   : > { %1051 = vperm.xlu1 %1777, %v1803_v25   ;;  %841 = vst.msk [vmem:[#allocation2 + $0xd8] sm:$0xff] %vm268_vm0, %v808_v26  ;;  %v799_v50 = vadd.f32 %v715_v30, %v319_v23  ;;  %962 = vst.msk [vmem:[%s2397_s19 + $0x88] sm:$0xff] %vm268_vm0, %v1805_v28 }
 0x111   : > { %1096 = vperm.xlu0 %1776, %v1805_v28   ;;  %1816 = vrsqrt.f32 %v895_v49  ;;  %v874_v55 = vld [vmem:[#allocation2 + $0xc8] sm:$0xff] }
 0x112   : > { %v1807_v32 = vpop.eup %1806  ;;  %832 = vst.msk [vmem:[#allocation2 + $0x90] sm:$0xff] %vm268_vm0, %v799_v50  ;;  %v770_v34 = vpop.xlane.xlu1 %769  ;;  %v906_v36 = vadd.f32 1.0, %v874_v55 }
 0x113   : > { %v1809_v37 = vpop.eup %1808  ;;  %v810_v40 = vadd.f32 %v770_v34, %v330_v31  ;;  %964 = vst.msk [vmem:[%s2397_s19 + $0x98] sm:$0xff] %vm268_vm0, %v1807_v32 }
 0x114   : > { %955 = vst.msk [vmem:[%s2397_s19 + $0x50] sm:$0xff] %vm268_vm0, %v1809_v37  ;;  %1061 = vperm.xlu1 %1777, %v1809_v37   ;;  %v865_v41 = vld [vmem:[#allocation2 + $0x80] sm:$0xff]  ;;  %1818 = vrsqrt.f32 %v906_v36  ;;  %v978_v36 = vld [vmem:[%s2140_s4 + $0x8] sm:$0xff] }
 0x115   : > { %1106 = vperm.xlu0 %1776, %v1807_v32   ;;  %843 = vst.msk [vmem:[#allocation2 + $0xe8] sm:$0xff] %vm268_vm0, %v810_v40  ;;  %v725_v45 = vpop.xlane.xlu0 %724  ;;  %v897_v46 = vadd.f32 1.0, %v865_v41  ;;  %v977_v32 = vld [vmem:[%s2140_s4] sm:$0xff] }
 0x116   : > { %v1811_v47 = vpop.eup %1810  ;;  %v801_v48 = vadd.f32 %v725_v45, %v321_v12 }
 0x117   : > { %966 = vst.msk [vmem:[%s2397_s19 + $0xa8] sm:$0xff] %vm268_vm0, %v1811_v47  ;;  %1820 = vrsqrt.f32 %v897_v46  ;;  %v876_v52 = vld [vmem:[#allocation2 + $0xd8] sm:$0xff]  ;;  %v979_v46 = vld [vmem:[%s2140_s4 + $0x10] sm:$0xff] }
 0x118   : > { %834 = vst.msk [vmem:[#allocation2 + $0xa0] sm:$0xff] %vm268_vm0, %v801_v48  ;;  %v780_v53 = vpop.xlane.xlu1 %779  ;;  %v908_v5 = vadd.f32 1.0, %v876_v52 }
 0x119   : > { %1116 = vperm.xlu0 %1776, %v1811_v47   ;;  %v1813_v56 = vpop.eup %1812  ;;  %v812_v6 = vadd.f32 %v780_v53, %v332_v51  ;;  %v867_v60 = vld [vmem:[#allocation2 + $0x90] sm:$0xff]  ;;  %v980_v47 = vld [vmem:[%s2140_s4 + $0x18] sm:$0xff] }
 0x11a   : > { %v735_v33 = vpop.xlane.xlu0 %734  ;;  %957 = vst.msk [vmem:[%s2397_s19 + $0x60] sm:$0xff] %vm268_vm0, %v1813_v56  ;;  %1071 = vperm.xlu1 %1777, %v1813_v56   ;;  %v899_v61 = vadd.f32 1.0, %v867_v60  ;;  %1822 = vrsqrt.f32 %v908_v5  ;;  %v981_v5 = vld [vmem:[%s2140_s4 + $0x20] sm:$0xff] }
 0x11b   : > { %845 = vst.msk [vmem:[#allocation2 + $0xf8] sm:$0xff] %vm268_vm0, %v812_v6  ;;  %v803_v0 = vadd.f32 %v735_v33, %v323_v54  ;;  %v982_v6 = vld [vmem:[%s2140_s4 + $0x28] sm:$0xff] }
 0x11c   : > { %v1815_v57 = vpop.eup %1814  ;;  %1824 = vrsqrt.f32 %v899_v61  ;;  %v878_v1 = vld [vmem:[#allocation2 + $0xe8] sm:$0xff] }
 0x11d   : > { %836 = vst.msk [vmem:[#allocation2 + $0xb0] sm:$0xff] %vm268_vm0, %v803_v0  ;;  %968 = vst.msk [vmem:[%s2397_s19 + $0xb8] sm:$0xff] %vm268_vm0, %v1815_v57  ;;  %1126 = vperm.xlu0 %1776, %v1815_v57   ;;  %v910_v3 = vadd.f32 1.0, %v878_v1  ;;  %v983_v1 = vld [vmem:[%s2140_s4 + $0x30] sm:$0xff] }
 0x11e   : > { %v1817_v7 = vpop.eup %1816  ;;  %v745_v8 = vpop.xlane.xlu0 %744 }
 0x11f   : > { %v805_v9 = vadd.f32 %v745_v8, %v325_v13  ;;  %959 = vst.msk [vmem:[%s2397_s19 + $0x70] sm:$0xff] %vm268_vm0, %v1817_v7  ;;  %1081 = vperm.xlu1 %1777, %v1817_v7   ;;  %v869_v35 = vld [vmem:[#allocation2 + $0xa0] sm:$0xff]  ;;  %1826 = vrsqrt.f32 %v910_v3  ;;  %v984_v3 = vld [vmem:[%s2140_s4 + $0x38] sm:$0xff] }
 0x120   : > { %v901_v10 = vadd.f32 1.0, %v869_v35  ;;  %v986_v35 = vld [vmem:[%s2140_s4 + $0x48] sm:$0xff] }
 0x121   : > { %v1819_v11 = vpop.eup %1818  ;;  %838 = vst.msk [vmem:[#allocation2 + $0xc0] sm:$0xff] %vm268_vm0, %v805_v9 }
 0x122   : > { %v755_v20 = vpop.xlane.xlu0 %754  ;;  %970 = vst.msk [vmem:[%s2397_s19 + $0xc8] sm:$0xff] %vm268_vm0, %v1819_v11  ;;  %1136 = vperm.xlu0 %1776, %v1819_v11   ;;  %1828 = vrsqrt.f32 %v901_v10  ;;  %v880_v38 = vld [vmem:[#allocation2 + $0xf8] sm:$0xff]  ;;  %v985_v10 = vld [vmem:[%s2140_s4 + $0x40] sm:$0xff] }
 0x123   : > { %v807_v14 = vadd.f32 %v755_v20, %v327_v16  ;;  %v912_v15 = vadd.f32 1.0, %v880_v38 }
 0x124   : > { %v1821_v58 = vpop.eup %1820  ;;  %v871_v42 = vld [vmem:[#allocation2 + $0xb0] sm:$0xff] }
 0x125   : > { %840 = vst.msk [vmem:[#allocation2 + $0xd0] sm:$0xff] %vm268_vm0, %v807_v14  ;;  %961 = vst.msk [vmem:[%s2397_s19 + $0x80] sm:$0xff] %vm268_vm0, %v1821_v58  ;;  %1091 = vperm.xlu1 %1777, %v1821_v58   ;;  %v903_v59 = vadd.f32 1.0, %v871_v42  ;;  %1830 = vrsqrt.f32 %v912_v15  ;;  %v988_v15 = vld [vmem:[%s2140_s4 + $0x58] sm:$0xff] }
 0x126   : > { %v765_v39 = vpop.xlane.xlu0 %764 }
 0x127   : > { %v1823_v2 = vpop.eup %1822  ;;  %v809_v44 = vadd.f32 %v765_v39, %v329_v62  ;;  %1832 = vrsqrt.f32 %v903_v59  ;;  %v987_v62 = vld [vmem:[%s2140_s4 + $0x50] sm:$0xff] }
 0x128   : > { %972 = vst.msk [vmem:[%s2397_s19 + $0xd8] sm:$0xff] %vm268_vm0, %v1823_v2  ;;  %1146 = vperm.xlu0 %1776, %v1823_v2   ;;  %v873_v43 = vld [vmem:[#allocation2 + $0xc0] sm:$0xff] }
 0x129   : > { %v1825_v17 = vpop.eup %1824  ;;  %842 = vst.msk [vmem:[#allocation2 + $0xe0] sm:$0xff] %vm268_vm0, %v809_v44  ;;  %v905_v18 = vadd.f32 1.0, %v873_v43  ;;  %v989_v43 = vld [vmem:[%s2140_s4 + $0x60] sm:$0xff] }
 0x12a   : > { %v775_v19 = vpop.xlane.xlu0 %774  ;;  %963 = vst.msk [vmem:[%s2397_s19 + $0x90] sm:$0xff] %vm268_vm0, %v1825_v17  ;;  %1101 = vperm.xlu1 %1777, %v1825_v17  }
 0x12b   : > { %v811_v21 = vadd.f32 %v775_v19, %v331_v29  ;;  %1834 = vrsqrt.f32 %v905_v18  ;;  %v990_v29 = vld [vmem:[%s2140_s4 + $0x68] sm:$0xff] }
 0x12c   : > { %v1827_v63 = vpop.eup %1826  ;;  %v875_v22 = vld [vmem:[#allocation2 + $0xd0] sm:$0xff] }
 0x12d   : > { %844 = vst.msk [vmem:[#allocation2 + $0xf0] sm:$0xff] %vm268_vm0, %v811_v21  ;;  %974 = vst.msk [vmem:[%s2397_s19 + $0xe8] sm:$0xff] %vm268_vm0, %v1827_v63  ;;  %1156 = vperm.xlu0 %1776, %v1827_v63   ;;  %v907_v4 = vadd.f32 1.0, %v875_v22  ;;  %v992_v63 = vld [vmem:[%s2140_s4 + $0x78] sm:$0xff] }
 0x12f   : > { %v1829_v23 = vpop.eup %1828  ;;  %1836 = vrsqrt.f32 %v907_v4  ;;  %v991_v4 = vld [vmem:[%s2140_s4 + $0x70] sm:$0xff] }
 0x130   : > { %965 = vst.msk [vmem:[%s2397_s19 + $0xa0] sm:$0xff] %vm268_vm0, %v1829_v23  ;;  %1111 = vperm.xlu1 %1777, %v1829_v23   ;;  %v877_v24 = vld [vmem:[#allocation2 + $0xe0] sm:$0xff] }
 0x131   : > { %v909_v25 = vadd.f32 1.0, %v877_v24 }
 0x132   : > { %v1831_v26 = vpop.eup %1830 }
 0x133   : > { %976 = vst.msk [vmem:[%s2397_s19 + $0xf8] sm:$0xff] %vm268_vm0, %v1831_v26  ;;  %1166 = vperm.xlu0 %1776, %v1831_v26   ;;  %1838 = vrsqrt.f32 %v909_v25 }
 0x134   : > { %v1833_v27 = vpop.eup %1832  ;;  %v879_v28 = vld [vmem:[#allocation2 + $0xf0] sm:$0xff] }
 0x135   : > { %967 = vst.msk [vmem:[%s2397_s19 + $0xb0] sm:$0xff] %vm268_vm0, %v1833_v27  ;;  %1121 = vperm.xlu1 %1777, %v1833_v27   ;;  %v911_v30 = vadd.f32 1.0, %v879_v28  ;;  %v994_v28 = vld [vmem:[%s2140_s4 + $0x88] sm:$0xff] }
 0x137   : > { %1840 = vrsqrt.f32 %v911_v30  ;;  %v993_v30 = vld [vmem:[%s2140_s4 + $0x80] sm:$0xff] }
 0x138   : > { %v1835_v49 = vpop.eup %1834 }
 0x139   : > { %969 = vst.msk [vmem:[%s2397_s19 + $0xc0] sm:$0xff] %vm268_vm0, %v1835_v49  ;;  %1131 = vperm.xlu1 %1777, %v1835_v49  }
 0x13c   : > { %v1837_v50 = vpop.eup %1836 }
 0x13d   : > { %971 = vst.msk [vmem:[%s2397_s19 + $0xd0] sm:$0xff] %vm268_vm0, %v1837_v50  ;;  %1141 = vperm.xlu1 %1777, %v1837_v50  }
 0x140   : > { %v1839_v31 = vpop.eup %1838 }
 0x141   : > { %973 = vst.msk [vmem:[%s2397_s19 + $0xe0] sm:$0xff] %vm268_vm0, %v1839_v31  ;;  %1151 = vperm.xlu1 %1777, %v1839_v31  }
 0x144   : > { %v1841_v55 = vpop.eup %1840 }
 0x145   : > { %975 = vst.msk [vmem:[%s2397_s19 + $0xf0] sm:$0xff] %vm268_vm0, %v1841_v55  ;;  %1161 = vperm.xlu1 %1777, %v1841_v55  }
 0x169   : > { %v1012_v34 = vpop.permute.xlu0 %1011 }
 0x16a   : > { %v1169_v40 = vmul.f32 %v1012_v34, %v977_v32  ;;  %v996_v32 = vld [vmem:[%s2140_s4 + $0x98] sm:$0xff] }
 0x16e   : > { %v1017_v37 = vpop.permute.xlu1 %1016 }
 0x16f   : > { %v1170_v12 = vmul.f32 %v1017_v37, %v978_v36  ;;  %v995_v36 = vld [vmem:[%s2140_s4 + $0x90] sm:$0xff] }
 0x171   : > { %v1609_v41 = vpack.c.bf16 %v1170_v12, %v1169_v40 }
 0x172   : > { %v1022_v45 = vpop.permute.xlu1 %1021 }
 0x173   : > { %1610 = vst [vmem:[%s2493_s6] sm:$0xff] %v1609_v41   ;;  %v1171_v51 = vmul.f32 %v1022_v45, %v979_v46  ;;  %v998_v46 = vld [vmem:[%s2140_s4 + $0xa8] sm:$0xff] }
 0x176   : > { %v1027_v48 = vpop.permute.xlu1 %1026 }
 0x177   : > { %v1172_v52 = vmul.f32 %v1027_v48, %v980_v47  ;;  %v997_v47 = vld [vmem:[%s2140_s4 + $0xa0] sm:$0xff] }
 0x179   : > { %v1614_v53 = vpack.c.bf16 %v1172_v52, %v1171_v51 }
 0x17a   : > { %v1032_v54 = vpop.permute.xlu1 %1031  ;;  %v1057_v56 = vpop.permute.xlu0 %1056 }
 0x17b   : > { %1686 = vst [vmem:[%s2493_s6 + $0x8] sm:$0xff] %v1614_v53   ;;  %v1173_v33 = vmul.f32 %v1032_v54, %v981_v5  ;;  %v1178_v38 = vmul.f32 %v1057_v56, %v986_v35  ;;  %v1000_v54 = vld [vmem:[%s2140_s4 + $0xb8] sm:$0xff]  ;;  %v999_v56 = vld [vmem:[%s2140_s4 + $0xb0] sm:$0xff] }
 0x17e   : > { %v1037_v60 = vpop.permute.xlu1 %1036  ;;  %v1067_v57 = vpop.permute.xlu0 %1066 }
 0x17f   : > { %v1174_v61 = vmul.f32 %v1037_v60, %v982_v6  ;;  %v1180_v39 = vmul.f32 %v1067_v57, %v988_v15  ;;  %v1001_v57 = vld [vmem:[%s2140_s4 + $0xc0] sm:$0xff] }
 0x181   : > { %v1619_v0 = vpack.c.bf16 %v1174_v61, %v1173_v33  ;;  %v1002_v61 = vld [vmem:[%s2140_s4 + $0xc8] sm:$0xff] }
 0x183   : > { %v1042_v13 = vpop.permute.xlu1 %1041  ;;  %1687 = vst [vmem:[%s2493_s6 + $0x10] sm:$0xff] %v1619_v0  }
 0x184   : > { %v1175_v8 = vmul.f32 %v1042_v13, %v983_v1  ;;  %v1077_v16 = vpop.permute.xlu0 %1076 }
 0x185   : > { %v1182_v19 = vmul.f32 %v1077_v16, %v990_v29 }
 0x187   : > { %v1047_v7 = vpop.permute.xlu1 %1046 }
 0x188   : > { %v1176_v9 = vmul.f32 %v1047_v7, %v984_v3  ;;  %v1087_v42 = vpop.permute.xlu0 %1086 }
 0x189   : > { %v1184_v25 = vmul.f32 %v1087_v42, %v992_v63 }
 0x18a   : > { %v1624_v11 = vpack.c.bf16 %v1176_v9, %v1175_v8  ;;  %v1004_v8 = vld [vmem:[%s2140_s4 + $0xd8] sm:$0xff]  ;;  %v1003_v9 = vld [vmem:[%s2140_s4 + $0xd0] sm:$0xff] }
 0x18b   : > { %v1052_v20 = vpop.permute.xlu1 %1051 }
 0x18c   : > { %1688 = vst [vmem:[%s2493_s6 + $0x18] sm:$0xff] %v1624_v11   ;;  %v1177_v14 = vmul.f32 %v1052_v20, %v985_v10  ;;  %v1097_v17 = vpop.permute.xlu0 %1096 }
 0x18d   : > { %v1186_v31 = vmul.f32 %v1097_v17, %v994_v28 }
 0x18e   : > { %v1629_v58 = vpack.c.bf16 %v1178_v38, %v1177_v14  ;;  %v1006_v38 = vld [vmem:[%s2140_s4 + $0xe8] sm:$0xff]  ;;  %v1005_v14 = vld [vmem:[%s2140_s4 + $0xe0] sm:$0xff] }
 0x18f   : > { %v1062_v59 = vpop.permute.xlu1 %1061 }
 0x190   : > { %1689 = vst [vmem:[%s2493_s6 + $0x20] sm:$0xff] %v1629_v58   ;;  %v1179_v2 = vmul.f32 %v1062_v59, %v987_v62  ;;  %v1107_v23 = vpop.permute.xlu0 %1106  ;;  %v1008_v59 = vld [vmem:[%s2140_s4 + $0xf8] sm:$0xff] }
 0x191   : > { %v1188_v40 = vmul.f32 %v1107_v23, %v996_v32 }
 0x192   : > { %v1634_v44 = vpack.c.bf16 %v1180_v39, %v1179_v2  ;;  %v1007_v2 = vld [vmem:[%s2140_s4 + $0xf0] sm:$0xff]  ;;  %s1904_s4 = scalar_lea.vmem %s1903_s9, 4096 }
 0x193   : > { %p1906_p4 = scmp.lt.s32.totalorder %s1904_s4, %s1898_s0 }
 0x194   : > { %1690 = vst [vmem:[%s2493_s6 + $0x28] sm:$0xff] %v1634_v44   ;;  %v1117_v49 = vpop.permute.xlu0 %1116 }
 0x195   : > { %v1072_v18 = vpop.permute.xlu1 %1071  ;;  %v1190_v51 = vmul.f32 %v1117_v49, %v998_v46  ;;  %p1907_p7 = por %p1906_p4, %p1905_p6 }
 0x196   : > { %v1181_v21 = vmul.f32 %v1072_v18, %v989_v43 }
 0x197   : > { %p1908_p10 = pnand %p1907_p7, %p1901_p5 }
 0x198   : > { %v1639_v22 = vpack.c.bf16 %v1182_v19, %v1181_v21  ;;  %v1127_v12 = vpop.permute.xlu0 %1126 }
 0x199   : > { %v1192_v60 = vmul.f32 %v1127_v12, %v1000_v54 }
 0x19a   : > { %1691 = vst [vmem:[%s2493_s6 + $0x30] sm:$0xff] %v1639_v22   ;;  %v1082_v24 = vpop.permute.xlu1 %1081 }
 0x19b   : > { %v1183_v26 = vmul.f32 %v1082_v24, %v991_v4 }
 0x19d   : > { %v1644_v27 = vpack.c.bf16 %v1184_v25, %v1183_v26  ;;  %v1137_v52 = vpop.permute.xlu0 %1136 }
 0x19e   : > { %v1194_v3 = vmul.f32 %v1137_v52, %v1002_v61 }
 0x19f   : > { %1692 = vst [vmem:[%s2493_s6 + $0x38] sm:$0xff] %v1644_v27  }
 0x1a0   : > { %v1092_v50 = vpop.permute.xlu1 %1091 }
 0x1a1   : > { %v1185_v55 = vmul.f32 %v1092_v50, %v993_v30 }
 0x1a3   : > { %v1649_v34 = vpack.c.bf16 %v1186_v31, %v1185_v55  ;;  %v1147_v0 = vpop.permute.xlu0 %1146 }
 0x1a4   : > { %v1196_v11 = vmul.f32 %v1147_v0, %v1004_v8 }
 0x1a5   : > { %1693 = vst [vmem:[%s2493_s6 + $0x40] sm:$0xff] %v1649_v34   ;;  %v1102_v37 = vpop.permute.xlu1 %1101 }
 0x1a6   : > { %v1187_v41 = vmul.f32 %v1102_v37, %v995_v36 }
 0x1a8   : > { %v1654_v45 = vpack.c.bf16 %v1188_v40, %v1187_v41  ;;  %v1157_v16 = vpop.permute.xlu0 %1156 }
 0x1a9   : > { %v1198_v62 = vmul.f32 %v1157_v16, %v1006_v38 }
 0x1aa   : > { %1694 = vst [vmem:[%s2493_s6 + $0x48] sm:$0xff] %v1654_v45  }
 0x1ab   : > { %v1112_v48 = vpop.permute.xlu1 %1111 }
 0x1ac   : > { %v1189_v53 = vmul.f32 %v1112_v48, %v997_v47 }
 0x1ae   : > { %v1659_v5 = vpack.c.bf16 %v1190_v51, %v1189_v53  ;;  %v1167_v39 = vpop.permute.xlu0 %1166 }
 0x1af   : > { %v1200_v43 = vmul.f32 %v1167_v39, %v1008_v59 }
 0x1b0   : > { %1695 = vst [vmem:[%s2493_s6 + $0x50] sm:$0xff] %v1659_v5   ;;  %v1122_v6 = vpop.permute.xlu1 %1121 }
 0x1b1   : > { %v1191_v33 = vmul.f32 %v1122_v6, %v999_v56 }
 0x1b3   : > { %v1664_v13 = vpack.c.bf16 %v1192_v60, %v1191_v33 }
 0x1b4   : > { %v1132_v1 = vpop.permute.xlu1 %1131 }
 0x1b5   : > { %1696 = vst [vmem:[%s2493_s6 + $0x58] sm:$0xff] %v1664_v13   ;;  %v1193_v7 = vmul.f32 %v1132_v1, %v1001_v57 }
 0x1b7   : > { %v1669_v35 = vpack.c.bf16 %v1194_v3, %v1193_v7 }
 0x1b8   : > { %v1142_v10 = vpop.permute.xlu1 %1141 }
 0x1b9   : > { %1697 = vst [vmem:[%s2493_s6 + $0x60] sm:$0xff] %v1669_v35   ;;  %v1195_v20 = vmul.f32 %v1142_v10, %v1003_v9 }
 0x1bb   : > { %v1674_v15 = vpack.c.bf16 %v1196_v11, %v1195_v20 }
 0x1bc   : > { %v1152_v58 = vpop.permute.xlu1 %1151 }
 0x1bd   : > { %1698 = vst [vmem:[%s2493_s6 + $0x68] sm:$0xff] %v1674_v15   ;;  %v1197_v42 = vmul.f32 %v1152_v58, %v1005_v14 }
 0x1bf   : > { %v1679_v44 = vpack.c.bf16 %v1198_v62, %v1197_v42 }
 0x1c0   : > { %v1162_v29 = vpop.permute.xlu1 %1161 }
 0x1c1   : > { %1699 = vst [vmem:[%s2493_s6 + $0x70] sm:$0xff] %v1679_v44   ;;  %v1199_v17 = vmul.f32 %v1162_v29, %v1007_v2 }
 0x1c3   : > { %v1684_v18 = vpack.c.bf16 %v1200_v43, %v1199_v17 }
 0x1c5   : > { %1700 = vst [vmem:[%s2493_s6 + $0x78] sm:$0xff] %v1684_v18  }
 0x1c6   : > { %1911 = shalt.err (!%p1908_p10)
}
 0x1c7   : > { %s1912_s24 = scalar_lea.hbm %s2545_s22, 2048  ;;  %s1916_s11 = scalar_lea.hbm %s2598_s2, 4096 }
 0x1c8   : > { %p1913_p1 = scmp.ne.s32.totalorder %s2545_s22, %s1912_s24  ;;  %p1917_p8 = scmp.lt.s32.totalorder %s2545_s22, %s2598_s2 }
 0x1c9   : > { %p1918_p0 = scmp.lt.s32.totalorder %s1916_s11, %s1912_s24 }
 0x1ca   : > { %p1914_p13 = pnand %p1913_p1, %p2066_p9 }
 0x1cb   : > { %p1919_p2 = por %p1918_p0, %p1917_p8 }
 0x1cc   : > { %p1915_p3 = pneg %p1914_p13 }
 0x1ce   : > { %p1920_p5 = pnand %p1919_p2, %p1915_p3 }
 0x1d0   : > { %1923 = shalt.err (!%p1920_p5)
}
 0x1d1   : > { %s1993_s21 = smov 64   ;;  %s1994_s6 = smov 4  }
 0x1d2   : > { %1705 = dma.vmem_to_hbm [thread:$0]  (%p2066_p9), %s2547_s30, 2048, %s2545_s22, %s1362_s23, %s1993_s21, %s1993_s21, %s1994_s6  }
 0x1d3 PF: > { %s1399_s8 = sand.u32 1, %s1962_s12   ;;  %p1715_p6 = pnand %p1519_p12, %p2073_p11 }
 0x1d4   : > { %s1400_s10 = scalar_lea.sflag [#allocation5], %s1399_s8 }
 0x1d5   : > { %p1716_p4 = pneg %p1715_p6 }
 0x1d7   : > { %1957 = dma.done.wait (%p1716_p4), %s1400_s10, 2048  }
 0x1d8   : > { %1959 = vsyncadd (%p1716_p4), %s1400_s10, 4294965248  ;;  %s23_s17 = sadd.s32 1, %s1982_s17   ;;  %s2609_s12 = smov %s1966_s13 }
 0x1d9   : > { %p20_p7 = scmp.ge.s32.totalorder %s23_s17, 4   ;;  %s2610_s13 = smov %s1970_s14 }
 0x1da   : > { %s2611_s14 = smov %s2071_s26  ;;  %s2612_s15 = smov %s1978_s16 }
 0x1db   : > { %s2613_s16 = smov %s2615_s20  ;;  %22 = sbr.rel (!%p20_p7) target bundleno = 10 (0xa), region = 106 }
 0x1e0   :  { %1413 = vsyncpa [#allocation4], 1 }
 0x1e1   :  { %1415 = vsyncpa [#allocation4 + $0x1], 1 }
 0x1e2   :  { %1416 = vsyncpa [#allocation7], 1 }
 0x1e3   :  { %1418 = vsyncpa [#allocation7 + $0x1], 1 }
 0x1e4   :  { %1419 = vsyncpa [#allocation5], 1 }
 0x1e5   :  { %1421 = vsyncpa [#allocation5 + $0x1], 1 }

</bundles_post_ra>
